<compile_context>
chip_gen: v5e
topology: v5e:2x2
jax: 0.10.0
libtpu: 0.0.40
codegen_flags: <defaults>
</compile_context>

<pallas_src>
import jax
import jax.numpy as jnp
from jax.experimental import pallas as pl
from jax.experimental.pallas import tpu as pltpu

IN_FEATURES = 784
HIDDEN = 512
OUT_FEATURES = 10
OUT_PADDED = 128  # lane-dense output width (multiple of 128)


def _cdiv(a, b):
    return -(-a // b)


def mlp_kernel(x_ref, w1_ref, b1_ref, w2_ref, b2_ref, w3_ref, b3_ref, o_ref):
    # Fully fused forward: relu(x@W1+b1) -> relu(@W2+b2) -> @W3+b3.
    # x arrives as f32 (no wrapper cast pass); the bf16 cast rides the idle VPU slot.
    # Weights are bf16 (native MXU dtype); biases and all accumulation stay f32.
    x = x_ref[...].astype(jnp.bfloat16)
    h1 = jnp.dot(x, w1_ref[...], preferred_element_type=jnp.float32) + b1_ref[...]
    h1 = jnp.maximum(h1, 0.0).astype(jnp.bfloat16)
    h2 = jnp.dot(h1, w2_ref[...], preferred_element_type=jnp.float32) + b2_ref[...]
    h2 = jnp.maximum(h2, 0.0).astype(jnp.bfloat16)
    logits = jnp.dot(h2, w3_ref[...], preferred_element_type=jnp.float32) + b3_ref[...]
    o_ref[...] = logits.astype(o_ref.dtype)  # bf16 store: halves padded-output HBM traffic


def _choose_tiling(B):
    """Return (tile_b, padded_B).

    * B <= 128: one small tile, B rounded up to 16 rows (bf16 sublane multiple);
      padding to 128 rows would be wasted HBM traffic in the weight-read-bound regime.
    * larger B: 128/256/512-row tiles with an EVEN tile count (balances v7x's 2 TCs;
      no effect on 1-TC v5e/v6e), capped at 512 rows for v5e's 16 MiB scoped VMEM.
    """
    if B <= 128:
        tile_b = max(16, 16 * _cdiv(B, 16))
        return tile_b, tile_b
    desired = 512 if B >= 2048 else (256 if B >= 512 else 128)
    num_tiles = 2 * max(1, _cdiv(B, 2 * desired))            # even grid
    tile_b = min(512, 128 * _cdiv(_cdiv(B, num_tiles), 128))  # 128-row multiple
    while num_tiles * tile_b < B:
        num_tiles += 2
    return tile_b, num_tiles * tile_b


@jax.jit
def mnist_forward(x, params):
    """x: (B, 1, 28, 28) float32 (NCHW, like PyTorch). Returns (B, 10) float32 logits."""
    w1, b1, w2, b2, w3, b3 = params
    B = x.shape[0]
    x2d = x.reshape(B, IN_FEATURES)  # same as torch x.view(-1, 784)

    tile_b, padded_B = _choose_tiling(B)
    num_tiles = padded_B // tile_b
    if padded_B != B:
        x2d = jnp.pad(x2d, ((0, padded_B - B), (0, 0)))

    # bf16 weights (memory-bound regime); x stays f32 (kernel casts); f32 biases.
    w1_bf = w1.astype(jnp.bfloat16)
    w2_bf = w2.astype(jnp.bfloat16)
    # Lane-dense output: zero-pad fc3 from 10 to 128 output columns.
    w3_p = jnp.pad(w3, ((0, 0), (0, OUT_PADDED - OUT_FEATURES))).astype(jnp.bfloat16)
    b3_p = jnp.pad(b3, ((0, 0), (0, OUT_PADDED - OUT_FEATURES)))

    # Weights/biases stay resident across batch tiles (index_map -> block (0, 0)).
    resident = lambda shape: pl.BlockSpec(shape, lambda i: (0, 0))

    flops = 2 * padded_B * (IN_FEATURES * HIDDEN + HIDDEN * HIDDEN + HIDDEN * OUT_PADDED)
    bytes_accessed = (
        padded_B * IN_FEATURES * 4                                        # x in (f32)
        + (IN_FEATURES * HIDDEN + HIDDEN * HIDDEN + HIDDEN * OUT_PADDED) * 2  # bf16 weights
        + (2 * HIDDEN + OUT_PADDED) * 4                                   # f32 biases
        + padded_B * OUT_PADDED * 2                                       # bf16 logits out
    )

    out_padded = pl.pallas_call(
        mlp_kernel,
        out_shape=jax.ShapeDtypeStruct((padded_B, OUT_PADDED), jnp.bfloat16),
        grid_spec=pltpu.PrefetchScalarGridSpec(
            num_scalar_prefetch=0,
            grid=(num_tiles,),
            in_specs=[
                pl.BlockSpec((tile_b, IN_FEATURES), lambda i: (i, 0)),  # x batch tile (f32)
                resident((IN_FEATURES, HIDDEN)),  # w1 (bf16)
                resident((1, HIDDEN)),            # b1 (f32)
                resident((HIDDEN, HIDDEN)),       # w2 (bf16)
                resident((1, HIDDEN)),            # b2 (f32)
                resident((HIDDEN, OUT_PADDED)),   # w3, padded to 128 cols (bf16)
                resident((1, OUT_PADDED)),        # b3, padded to 128 cols (f32)
            ],
            out_specs=pl.BlockSpec((tile_b, OUT_PADDED), lambda i: (i, 0)),
        ),
        compiler_params=pltpu.CompilerParams(
            dimension_semantics=("parallel",),
        ),
        cost_estimate=pl.CostEstimate(
            flops=flops, transcendentals=0, bytes_accessed=bytes_accessed
        ),
    )(x2d, w1_bf, b1, w2_bf, b2, w3_p, b3_p)

    # Drop pad rows / pad cols. NOTE: padded rows hold relu(b)-derived garbage; any
    # future fused reduction over the padded output must mask them. The tiny (B, 10)
    # f32 cast keeps the PyTorch-like f32 logits API at negligible cost.
    return out_padded[:B, :OUT_FEATURES].astype(jnp.float32)


def init_params(key):
    """Deterministic init mimicking torch.nn.Linear default (U[-1/sqrt(fan_in), +])."""
    ks = jax.random.split(key, 6)

    def linear(kw, kb, fan_in, fan_out):
        bound = 1.0 / jnp.sqrt(float(fan_in))
        # Stored as (in, out) so the kernel computes x @ W + b.
        w = jax.random.uniform(kw, (fan_in, fan_out), jnp.float32, -bound, bound)
        b = jax.random.uniform(kb, (1, fan_out), jnp.float32, -bound, bound)
        return w, b

    w1, b1 = linear(ks[0], ks[1], IN_FEATURES, HIDDEN)
    w2, b2 = linear(ks[2], ks[3], HIDDEN, HIDDEN)
    w3, b3 = linear(ks[4], ks[5], HIDDEN, OUT_FEATURES)
    return (w1, b1, w2, b2, w3, b3)


def reference_forward(x, params):
    """Pure-JAX reference mirroring the kernel's bf16-input / f32-accumulate math."""
    w1, b1, w2, b2, w3, b3 = params
    B = x.shape[0]
    h = x.reshape(B, IN_FEATURES).astype(jnp.bfloat16)
    h = jnp.dot(h, w1.astype(jnp.bfloat16), preferred_element_type=jnp.float32) + b1
    h = jnp.maximum(h, 0.0).astype(jnp.bfloat16)
    h = jnp.dot(h, w2.astype(jnp.bfloat16), preferred_element_type=jnp.float32) + b2
    h = jnp.maximum(h, 0.0).astype(jnp.bfloat16)
    logits = jnp.dot(h, w3.astype(jnp.bfloat16), preferred_element_type=jnp.float32) + b3
    return logits.astype(jnp.bfloat16).astype(jnp.float32)  # match kernel's bf16 store


if __name__ == "__main__":
    key = jax.random.PRNGKey(0)
    pkey, xkey1, xkey2 = jax.random.split(key, 3)
    params = init_params(pkey)

    # Small MNIST-like batch: NCHW (B=8, C=1, H=28, W=28) -> single 16-row tile path.
    x_small = jax.random.normal(xkey1, (8, 1, 28, 28), dtype=jnp.float32)
    out_small = jax.block_until_ready(mnist_forward(x_small, params))
    assert out_small.shape == (8, 10)
    ref_small = reference_forward(x_small, params)
    assert jnp.allclose(out_small, ref_small, atol=3e-2, rtol=3e-2), "small-batch mismatch"

    # Multi-tile path: B=192 -> grid of 2 parallel 128-row tiles (even grid for v7x).
    x_big = jax.random.normal(xkey2, (192, 1, 28, 28), dtype=jnp.float32)
    out_big = jax.block_until_ready(mnist_forward(x_big, params))
    assert out_big.shape == (192, 10)
    ref_big = reference_forward(x_big, params)
    assert jnp.allclose(out_big, ref_big, atol=3e-2, rtol=3e-2), "multi-tile mismatch"

    print("KERNEL_OK")
</pallas_src>

<mosaic_0001>
module attributes {stable_mosaic.version = 11 : i64} {
  func.func @mlp_kernel(%arg0: i32, %arg1: memref<16x784xf32, #tpu.memory_space<vmem>>, %arg2: memref<784x512xbf16, #tpu.memory_space<vmem>>, %arg3: memref<1x512xf32, #tpu.memory_space<vmem>>, %arg4: memref<512x512xbf16, #tpu.memory_space<vmem>>, %arg5: memref<1x512xf32, #tpu.memory_space<vmem>>, %arg6: memref<512x128xbf16, #tpu.memory_space<vmem>>, %arg7: memref<1x128xf32, #tpu.memory_space<vmem>>, %arg8: memref<16x128xbf16, #tpu.memory_space<vmem>>) attributes {dimension_semantics = [#tpu.dimension_semantics<parallel>], iteration_bounds = array<i64: 1>, scalar_prefetch = 0 : i64, scratch_operands = 0 : i64, tpu.core_type = #tpu.core_type<tc>, window_params = [{transform_indices = @transform_0, window_bounds = array<i64: 16, 784>}, {pipeline_mode = #tpu.pipeline_mode<synchronous>, transform_indices = @transform_1, window_bounds = array<i64: 784, 512>}, {pipeline_mode = #tpu.pipeline_mode<synchronous>, transform_indices = @transform_2, window_bounds = array<i64: 1, 512>}, {pipeline_mode = #tpu.pipeline_mode<synchronous>, transform_indices = @transform_3, window_bounds = array<i64: 512, 512>}, {pipeline_mode = #tpu.pipeline_mode<synchronous>, transform_indices = @transform_4, window_bounds = array<i64: 1, 512>}, {pipeline_mode = #tpu.pipeline_mode<synchronous>, transform_indices = @transform_5, window_bounds = array<i64: 512, 128>}, {pipeline_mode = #tpu.pipeline_mode<synchronous>, transform_indices = @transform_6, window_bounds = array<i64: 1, 128>}, {transform_indices = @transform_7, window_bounds = array<i64: 16, 128>}]} {
    %c0 = arith.constant 0 : index
    %c0_0 = arith.constant 0 : index
    %0 = vector.load %arg1[%c0, %c0_0] : memref<16x784xf32, #tpu.memory_space<vmem>>, vector<16x784xf32>
    %1 = arith.truncf %0 : vector<16x784xf32> to vector<16x784xbf16>
    %c0_1 = arith.constant 0 : index
    %c0_2 = arith.constant 0 : index
    %2 = vector.load %arg2[%c0_1, %c0_2] : memref<784x512xbf16, #tpu.memory_space<vmem>>, vector<784x512xbf16>
    %cst = arith.constant dense<0.000000e+00> : vector<16x512xf32>
    %3 = tpu.matmul %1, %2, %cst {dimension_numbers = #tpu.dot_dimension_numbers<[1], [0], [0], [1], [0, 0, 1, 1], [], []>} : vector<16x784xbf16>, vector<784x512xbf16>, vector<16x512xf32> -> vector<16x512xf32>
    %c0_3 = arith.constant 0 : index
    %c0_4 = arith.constant 0 : index
    %4 = vector.load %arg3[%c0_3, %c0_4] : memref<1x512xf32, #tpu.memory_space<vmem>>, vector<1x512xf32>
    %5 = vector.broadcast %4 : vector<1x512xf32> to vector<16x512xf32>
    %6 = arith.addf %3, %5 : vector<16x512xf32>
    %cst_5 = arith.constant 0.000000e+00 : f32
    %7 = vector.broadcast %cst_5 : f32 to vector<16x512xf32>
    %8 = arith.maximumf %6, %7 : vector<16x512xf32>
    %9 = arith.truncf %8 : vector<16x512xf32> to vector<16x512xbf16>
    %c0_6 = arith.constant 0 : index
    %c0_7 = arith.constant 0 : index
    %10 = vector.load %arg4[%c0_6, %c0_7] : memref<512x512xbf16, #tpu.memory_space<vmem>>, vector<512x512xbf16>
    %cst_8 = arith.constant dense<0.000000e+00> : vector<16x512xf32>
    %11 = tpu.matmul %9, %10, %cst_8 {dimension_numbers = #tpu.dot_dimension_numbers<[1], [0], [0], [1], [0, 0, 1, 1], [], []>} : vector<16x512xbf16>, vector<512x512xbf16>, vector<16x512xf32> -> vector<16x512xf32>
    %c0_9 = arith.constant 0 : index
    %c0_10 = arith.constant 0 : index
    %12 = vector.load %arg5[%c0_9, %c0_10] : memref<1x512xf32, #tpu.memory_space<vmem>>, vector<1x512xf32>
    %13 = vector.broadcast %12 : vector<1x512xf32> to vector<16x512xf32>
    %14 = arith.addf %11, %13 : vector<16x512xf32>
    %cst_11 = arith.constant 0.000000e+00 : f32
    %15 = vector.broadcast %cst_11 : f32 to vector<16x512xf32>
    %16 = arith.maximumf %14, %15 : vector<16x512xf32>
    %17 = arith.truncf %16 : vector<16x512xf32> to vector<16x512xbf16>
    %c0_12 = arith.constant 0 : index
    %c0_13 = arith.constant 0 : index
    %18 = vector.load %arg6[%c0_12, %c0_13] : memref<512x128xbf16, #tpu.memory_space<vmem>>, vector<512x128xbf16>
    %cst_14 = arith.constant dense<0.000000e+00> : vector<16x128xf32>
    %19 = tpu.matmul %17, %18, %cst_14 {dimension_numbers = #tpu.dot_dimension_numbers<[1], [0], [0], [1], [0, 0, 1, 1], [], []>} : vector<16x512xbf16>, vector<512x128xbf16>, vector<16x128xf32> -> vector<16x128xf32>
    %c0_15 = arith.constant 0 : index
    %c0_16 = arith.constant 0 : index
    %20 = vector.load %arg7[%c0_15, %c0_16] : memref<1x128xf32, #tpu.memory_space<vmem>>, vector<1x128xf32>
    %21 = vector.broadcast %20 : vector<1x128xf32> to vector<16x128xf32>
    %22 = arith.addf %19, %21 : vector<16x128xf32>
    %23 = arith.truncf %22 : vector<16x128xf32> to vector<16x128xbf16>
    %c0_17 = arith.constant 0 : index
    %c0_18 = arith.constant 0 : index
    %24 = vector.load %arg8[%c0_17, %c0_18] : memref<16x128xbf16, #tpu.memory_space<vmem>>, vector<16x128xbf16>
    tpu.vector_store %arg8[%c0_17, %c0_18], %23 {strides = array<i32>} : memref<16x128xbf16, #tpu.memory_space<vmem>>, vector<16x128xbf16>,
    return
  }
  func.func @transform_0(%arg0: i32) -> (i32, i32) {
    %c0_i32 = arith.constant 0 : i32
    %c0_i32_0 = arith.constant 0 : i32
    return %arg0, %c0_i32 : i32, i32
  }
  func.func @transform_1(%arg0: i32) -> (i32, i32) {
    %c0_i32 = arith.constant 0 : i32
    %c0_i32_0 = arith.constant 0 : i32
    %c0_i32_1 = arith.constant 0 : i32
    return %c0_i32, %c0_i32_0 : i32, i32
  }
  func.func @transform_2(%arg0: i32) -> (i32, i32) {
    %c0_i32 = arith.constant 0 : i32
    %c0_i32_0 = arith.constant 0 : i32
    %c0_i32_1 = arith.constant 0 : i32
    return %c0_i32, %c0_i32_0 : i32, i32
  }
  func.func @transform_3(%arg0: i32) -> (i32, i32) {
    %c0_i32 = arith.constant 0 : i32
    %c0_i32_0 = arith.constant 0 : i32
    %c0_i32_1 = arith.constant 0 : i32
    return %c0_i32, %c0_i32_0 : i32, i32
  }
  func.func @transform_4(%arg0: i32) -> (i32, i32) {
    %c0_i32 = arith.constant 0 : i32
    %c0_i32_0 = arith.constant 0 : i32
    %c0_i32_1 = arith.constant 0 : i32
    return %c0_i32, %c0_i32_0 : i32, i32
  }
  func.func @transform_5(%arg0: i32) -> (i32, i32) {
    %c0_i32 = arith.constant 0 : i32
    %c0_i32_0 = arith.constant 0 : i32
    %c0_i32_1 = arith.constant 0 : i32
    return %c0_i32, %c0_i32_0 : i32, i32
  }
  func.func @transform_6(%arg0: i32) -> (i32, i32) {
    %c0_i32 = arith.constant 0 : i32
    %c0_i32_0 = arith.constant 0 : i32
    %c0_i32_1 = arith.constant 0 : i32
    return %c0_i32, %c0_i32_0 : i32, i32
  }
  func.func @transform_7(%arg0: i32) -> (i32, i32) {
    %c0_i32 = arith.constant 0 : i32
    %c0_i32_0 = arith.constant 0 : i32
    return %arg0, %c0_i32 : i32, i32
  }
}

</mosaic_0001>

<bundles_post_ra>
// kernel: mnist_forward.1
= control target key start
LH: loop header
LB: loop body
LE: loop exit
PB: predicated region body
PF: predicated region fallthrough
CT: control target
= control target key end

     0   :  { %vm1234_vm0 = vcmask 130048   ;;  %s7007_s1 = inlined_call_operand.vmem [shape: bf16[784,512], index: 1, kind: input, shape index: {}]   ;;  %s7008_s0 = inlined_call_operand.vmem [shape: f32[16,784], index: 0, kind: input, shape index: {}]   ;;  %s7009_s2 = inlined_call_operand.vmem [shape: f32[1,512], index: 2, kind: input, shape index: {}]   ;;  %s7010_s3 = inlined_call_operand.vmem [shape: bf16[512,512], index: 3, kind: input, shape index: {}]   ;;  %s7011_s5 = inlined_call_operand.vmem [shape: bf16[512,128], index: 5, kind: input, shape index: {}]   ;;  %s7012_s6 = inlined_call_operand.vmem [shape: f32[1,128], index: 6, kind: input, shape index: {}]   ;;  %s7013_s4 = inlined_call_operand.vmem [shape: f32[1,512], index: 4, kind: input, shape index: {}]   ;;  %s7014_s7 = inlined_call_operand.vmem [shape: bf16[16,128], index: 7, kind: output, shape index: {}]  }
   0x1   :  { %v3094_v0 = vld [vmem:[%s7007_s1 + $0xe0] sm:$0xf]  ;;  %v4438_v1 = vld [vmem:[%s7007_s1 + $0xec] sm:$0xf0] }
   0x2   :  { %v3222_v2 = vld [vmem:[%s7007_s1 + $0x1e0] sm:$0xf]  ;;  %v3095_v3 = vor.u32 %v4438_v1, %v3094_v0  ;;  %v4470_v4 = vld [vmem:[%s7007_s1 + $0x1ec] sm:$0xf0] }
   0x3   :  { %v3350_v5 = vld [vmem:[%s7007_s1 + $0x2e0] sm:$0xf]  ;;  %v4502_v6 = vld [vmem:[%s7007_s1 + $0x2ec] sm:$0xf0]  ;;  %v3223_v7 = vor.u32 %v4470_v4, %v3222_v2 }
   0x4   :  { %v3351_v8 = vor.u32 %v4502_v6, %v3350_v5  ;;  %v3478_v9 = vld [vmem:[%s7007_s1 + $0x3e0] sm:$0xf]  ;;  %v4534_v10 = vld [vmem:[%s7007_s1 + $0x3ec] sm:$0xf0]  ;;  %1238 = vmatpush.bf16.msra.mxu0 %v3095_v3 }
   0x5   :  { %v3078_v11 = vld [vmem:[%s7007_s1 + $0xc0] sm:$0xf]  ;;  %v3479_v12 = vor.u32 %v4534_v10, %v3478_v9  ;;  %v4434_v13 = vld [vmem:[%s7007_s1 + $0xcc] sm:$0xf0]  ;;  %1252 = vmatpush.bf16.msra.mxu1 %v3223_v7 }
   0x6   :  { %v3206_v14 = vld [vmem:[%s7007_s1 + $0x1c0] sm:$0xf]  ;;  %v4466_v15 = vld [vmem:[%s7007_s1 + $0x1cc] sm:$0xf0]  ;;  %1266 = vmatpush.bf16.msra.mxu2 %v3351_v8  ;;  %v3079_v16 = vor.u32 %v4434_v13, %v3078_v11 }
   0x7   :  { %v3207_v17 = vor.u32 %v4466_v15, %v3206_v14  ;;  %v3334_v18 = vld [vmem:[%s7007_s1 + $0x2c0] sm:$0xf]  ;;  %v4498_v19 = vld [vmem:[%s7007_s1 + $0x2cc] sm:$0xf0]  ;;  %1280 = vmatpush.bf16.msra.mxu3 %v3479_v12 }
   0x8   :  { %v3462_v20 = vld [vmem:[%s7007_s1 + $0x3c0] sm:$0xf]  ;;  %v3335_v21 = vor.u32 %v4498_v19, %v3334_v18  ;;  %v4530_v22 = vld [vmem:[%s7007_s1 + $0x3cc] sm:$0xf0]  ;;  %1239 = vmatpush.bf16.msra.mxu0 %v3079_v16 }
   0x9   :  { %v3062_v23 = vld [vmem:[%s7007_s1 + $0xa0] sm:$0xf]  ;;  %v4430_v24 = vld [vmem:[%s7007_s1 + $0xac] sm:$0xf0]  ;;  %v3463_v25 = vor.u32 %v4530_v22, %v3462_v20  ;;  %1253 = vmatpush.bf16.msra.mxu1 %v3207_v17 }
   0xa   :  { %v3190_v26 = vld [vmem:[%s7007_s1 + $0x1a0] sm:$0xf]  ;;  %v4462_v27 = vld [vmem:[%s7007_s1 + $0x1ac] sm:$0xf0]  ;;  %v3063_v29 = vor.u32 %v4430_v24, %v3062_v23  ;;  %1267 = vmatpush.bf16.msra.mxu2 %v3335_v21 }
   0xb   :  { %v3318_v28 = vld [vmem:[%s7007_s1 + $0x2a0] sm:$0xf]  ;;  %v4494_v30 = vld [vmem:[%s7007_s1 + $0x2ac] sm:$0xf0]  ;;  %v3191_v33 = vor.u32 %v4462_v27, %v3190_v26  ;;  %1281 = vmatpush.bf16.msra.mxu3 %v3463_v25 }
   0xc   :  { %v3446_v31 = vld [vmem:[%s7007_s1 + $0x3a0] sm:$0xf]  ;;  %v4526_v32 = vld [vmem:[%s7007_s1 + $0x3ac] sm:$0xf0]  ;;  %v3319_v34 = vor.u32 %v4494_v30, %v3318_v28  ;;  %1240 = vmatpush.bf16.msra.mxu0 %v3063_v29 }
   0xd   :  { %v3046_v35 = vld [vmem:[%s7007_s1 + $0x80] sm:$0xf]  ;;  %v4426_v36 = vld [vmem:[%s7007_s1 + $0x8c] sm:$0xf0]  ;;  %v3447_v38 = vor.u32 %v4526_v32, %v3446_v31  ;;  %1254 = vmatpush.bf16.msra.mxu1 %v3191_v33  ;;  %v4436_v32 = vld [vmem:[%s7007_s1 + $0xe4] sm:$0xf] }
   0xe   :  { %v3174_v37 = vld [vmem:[%s7007_s1 + $0x180] sm:$0xf]  ;;  %v4458_v39 = vld [vmem:[%s7007_s1 + $0x18c] sm:$0xf0]  ;;  %v3047_v44 = vor.u32 %v4426_v36, %v3046_v35  ;;  %1268 = vmatpush.bf16.msra.mxu2 %v3319_v34  ;;  %v3096_v33 = vld [vmem:[%s7007_s1 + $0xf0] sm:$0xf0] }
   0xf   :  { %v3302_v40 = vld [vmem:[%s7007_s1 + $0x280] sm:$0xf]  ;;  %v4490_v41 = vld [vmem:[%s7007_s1 + $0x28c] sm:$0xf0]  ;;  %v3175_v45 = vor.u32 %v4458_v39, %v3174_v37  ;;  %1282 = vmatpush.bf16.msra.mxu3 %v3447_v38  ;;  %v36_v36 = vld [vmem:[%s7008_s0 + $0x48] sm:$0xff] }
  0x10   :  { %v3430_v42 = vld [vmem:[%s7007_s1 + $0x380] sm:$0xf]  ;;  %v4522_v43 = vld [vmem:[%s7007_s1 + $0x38c] sm:$0xf0]  ;;  %v3303_v46 = vor.u32 %v4490_v41, %v3302_v40  ;;  %1241 = vmatpush.bf16.msra.mxu0 %v3047_v44  ;;  %v4468_v41 = vld [vmem:[%s7007_s1 + $0x1e4] sm:$0xf] }
  0x11   :  { %v3030_v47 = vld [vmem:[%s7007_s1 + $0x60] sm:$0xf]  ;;  %v4422_v48 = vld [vmem:[%s7007_s1 + $0x6c] sm:$0xf0]  ;;  %v3431_v50 = vor.u32 %v4522_v43, %v3430_v42  ;;  %1255 = vmatpush.bf16.msra.mxu1 %v3175_v45  ;;  %v34_v43 = vld [vmem:[%s7008_s0 + $0x38] sm:$0xff] }
  0x12   :  { %v3158_v49 = vld [vmem:[%s7007_s1 + $0x160] sm:$0xf]  ;;  %v4454_v51 = vld [vmem:[%s7007_s1 + $0x16c] sm:$0xf0]  ;;  %v3031_v56 = vor.u32 %v4422_v48, %v3030_v47  ;;  %1269 = vmatpush.bf16.msra.mxu2 %v3303_v46  ;;  %v3224_v46 = vld [vmem:[%s7007_s1 + $0x1f0] sm:$0xf0] }
  0x13   :  { %v3286_v52 = vld [vmem:[%s7007_s1 + $0x260] sm:$0xf]  ;;  %v4486_v53 = vld [vmem:[%s7007_s1 + $0x26c] sm:$0xf0]  ;;  %v3159_v57 = vor.u32 %v4454_v51, %v3158_v49  ;;  %1283 = vmatpush.bf16.msra.mxu3 %v3431_v50  ;;  %v30_v47 = vld [vmem:[%s7008_s0 + $0x18] sm:$0xff]  ;;  %v3099_v50 = vor.u32 %v4436_v32, %v3096_v33 }
  0x14   :  { %v3414_v54 = vld [vmem:[%s7007_s1 + $0x360] sm:$0xf]  ;;  %v4518_v55 = vld [vmem:[%s7007_s1 + $0x36c] sm:$0xf0]  ;;  %v3287_v58 = vor.u32 %v4486_v53, %v3286_v52  ;;  %1242 = vmatpush.bf16.msra.mxu0 %v3031_v56 }
  0x15   :  { %v3014_v59 = vld [vmem:[%s7007_s1 + $0x40] sm:$0xf]  ;;  %v4418_v60 = vld [vmem:[%s7007_s1 + $0x4c] sm:$0xf0]  ;;  %v3415_v62 = vor.u32 %v4518_v55, %v3414_v54  ;;  %1256 = vmatpush.bf16.msra.mxu1 %v3159_v57  ;;  %v4432_v57 = vld [vmem:[%s7007_s1 + $0xc4] sm:$0xf] }
  0x16   :  { %v3142_v61 = vld [vmem:[%s7007_s1 + $0x140] sm:$0xf]  ;;  %v4450_v63 = vld [vmem:[%s7007_s1 + $0x14c] sm:$0xf0]  ;;  %v3015_v4 = vor.u32 %v4418_v60, %v3014_v59  ;;  %1270 = vmatpush.bf16.msra.mxu2 %v3287_v58  ;;  %v3080_v58 = vld [vmem:[%s7007_s1 + $0xd0] sm:$0xf0] }
  0x17   :  { %v3270_v0 = vld [vmem:[%s7007_s1 + $0x240] sm:$0xf]  ;;  %v4482_v1 = vld [vmem:[%s7007_s1 + $0x24c] sm:$0xf0]  ;;  %v3143_v6 = vor.u32 %v4450_v63, %v3142_v61  ;;  %1284 = vmatpush.bf16.msra.mxu3 %v3415_v62  ;;  %v28_v61 = vld [vmem:[%s7008_s0 + $0x8] sm:$0xff]  ;;  %v3227_v63 = vor.u32 %v4468_v41, %v3224_v46 }
  0x18   :  { %v3398_v2 = vld [vmem:[%s7007_s1 + $0x340] sm:$0xf]  ;;  %v4514_v3 = vld [vmem:[%s7007_s1 + $0x34c] sm:$0xf0]  ;;  %v3271_v7 = vor.u32 %v4482_v1, %v3270_v0  ;;  %1243 = vmatpush.bf16.msra.mxu0 %v3015_v4  ;;  %v4464_v1 = vld [vmem:[%s7007_s1 + $0x1c4] sm:$0xf]  ;;  %v3083_v4 = vor.u32 %v4432_v57, %v3080_v58 }
  0x19   :  { %v2998_v5 = vld [vmem:[%s7007_s1 + $0x20] sm:$0xf]  ;;  %v4414_v8 = vld [vmem:[%s7007_s1 + $0x2c] sm:$0xf0]  ;;  %v3399_v11 = vor.u32 %v4514_v3, %v3398_v2  ;;  %1257 = vmatpush.bf16.msra.mxu1 %v3143_v6  ;;  %v3208_v2 = vld [vmem:[%s7007_s1 + $0x1d0] sm:$0xf0] }
  0x1a   :  { %v3126_v9 = vld [vmem:[%s7007_s1 + $0x120] sm:$0xf]  ;;  %v4446_v10 = vld [vmem:[%s7007_s1 + $0x12c] sm:$0xf0]  ;;  %v2999_v18 = vor.u32 %v4414_v8, %v2998_v5  ;;  %1271 = vmatpush.bf16.msra.mxu2 %v3271_v7  ;;  %v3160_v41 = vld [vmem:[%s7007_s1 + $0x170] sm:$0xf0] }
  0x1b   :  { %v3254_v12 = vld [vmem:[%s7007_s1 + $0x220] sm:$0xf]  ;;  %v4478_v13 = vld [vmem:[%s7007_s1 + $0x22c] sm:$0xf0]  ;;  %v3127_v23 = vor.u32 %v4446_v10, %v3126_v9  ;;  %1285 = vmatpush.bf16.msra.mxu3 %v3399_v11  ;;  %v4428_v10 = vld [vmem:[%s7007_s1 + $0xa4] sm:$0xf] }
  0x1c   :  { %v3382_v14 = vld [vmem:[%s7007_s1 + $0x320] sm:$0xf]  ;;  %v4510_v15 = vld [vmem:[%s7007_s1 + $0x32c] sm:$0xf0]  ;;  %v3255_v24 = vor.u32 %v4478_v13, %v3254_v12  ;;  %1244 = vmatpush.bf16.msra.mxu0 %v2999_v18  ;;  %v3064_v11 = vld [vmem:[%s7007_s1 + $0xb0] sm:$0xf0]  ;;  %v3211_v12 = vor.u32 %v4464_v1, %v3208_v2 }
  0x1d   :  { %v2982_v16 = vld [vmem:[%s7007_s1] sm:$0xf]  ;;  %v4410_v17 = vld [vmem:[%s7007_s1 + $0xc] sm:$0xf0]  ;;  %v3383_v28 = vor.u32 %v4510_v15, %v3382_v14  ;;  %1258 = vmatpush.bf16.msra.mxu1 %v3127_v23  ;;  %v4460_v14 = vld [vmem:[%s7007_s1 + $0x1a4] sm:$0xf] }
  0x1e   :  { %v3110_v19 = vld [vmem:[%s7007_s1 + $0x100] sm:$0xf]  ;;  %v4442_v20 = vld [vmem:[%s7007_s1 + $0x10c] sm:$0xf0]  ;;  %v2983_v35 = vor.u32 %v4410_v17, %v2982_v16  ;;  %1272 = vmatpush.bf16.msra.mxu2 %v3255_v24  ;;  %v3192_v15 = vld [vmem:[%s7007_s1 + $0x1b0] sm:$0xf0]  ;;  %v3067_v17 = vor.u32 %v4428_v10, %v3064_v11 }
  0x1f   :  { %v3238_v21 = vld [vmem:[%s7007_s1 + $0x200] sm:$0xf]  ;;  %v4474_v22 = vld [vmem:[%s7007_s1 + $0x20c] sm:$0xf0]  ;;  %v3111_v39 = vor.u32 %v4442_v20, %v3110_v19  ;;  %1286 = vmatpush.bf16.msra.mxu3 %v3383_v28  ;;  %v3048_v23 = vld [vmem:[%s7007_s1 + $0x90] sm:$0xf0]  ;;  %v3195_v24 = vor.u32 %v4460_v14, %v3192_v15 }
  0x20   :  { %v3366_v25 = vld [vmem:[%s7007_s1 + $0x300] sm:$0xf]  ;;  %v4506_v26 = vld [vmem:[%s7007_s1 + $0x30c] sm:$0xf0]  ;;  %v3239_v40 = vor.u32 %v4474_v22, %v3238_v21  ;;  %1245 = vmatpush.bf16.msra.mxu0 %v2983_v35  ;;  %v4424_v22 = vld [vmem:[%s7007_s1 + $0x84] sm:$0xf] }
  0x21   :  { %v3606_v27 = vld [vmem:[%s7007_s1 + $0x4e0] sm:$0xf]  ;;  %v4566_v29 = vld [vmem:[%s7007_s1 + $0x4ec] sm:$0xf0]  ;;  %v3367_v44 = vor.u32 %v4506_v26, %v3366_v25  ;;  %1259 = vmatpush.bf16.msra.mxu1 %v3111_v39  ;;  %v4456_v26 = vld [vmem:[%s7007_s1 + $0x184] sm:$0xf] }
  0x22   :  { %v3734_v30 = vld [vmem:[%s7007_s1 + $0x5e0] sm:$0xf]  ;;  %v4598_v31 = vld [vmem:[%s7007_s1 + $0x5ec] sm:$0xf0]  ;;  %v3607_v45 = vor.u32 %v4566_v29, %v3606_v27  ;;  %1273 = vmatpush.bf16.msra.mxu2 %v3239_v40  ;;  %v3176_v27 = vld [vmem:[%s7007_s1 + $0x190] sm:$0xf0]  ;;  %v3051_v29 = vor.u32 %v4424_v22, %v3048_v23 }
  0x23   :  { %v29_v34 = vld [vmem:[%s7008_s0 + $0x10] sm:$0xff]  ;;  %v3750_v37 = vld [vmem:[%s7007_s1 + $0x600] sm:$0xf]  ;;  %v3735_v49 = vor.u32 %v4598_v31, %v3734_v30  ;;  %1287 = vmatpush.bf16.msra.mxu3 %v3367_v44  ;;  %v4452_v40 = vld [vmem:[%s7007_s1 + $0x164] sm:$0xf] }
  0x24   :  { %v4602_v38 = vld [vmem:[%s7007_s1 + $0x60c] sm:$0xf0]  ;;  %v27_v42 = vld [vmem:[%s7008_s0] sm:$0xff]  ;;  %v5059_v54 = vpack.c.bf16 %v36_v36, %v29_v34  ;;  %1294 = vmatpush.bf16.msrb.mxu0 %v3607_v45  ;;  %v3032_v35 = vld [vmem:[%s7007_s1 + $0x70] sm:$0xf0] }
  0x25   :  { %v37_v48 = vld [vmem:[%s7008_s0 + $0x50] sm:$0xff]  ;;  %v3590_v51 = vld [vmem:[%s7007_s1 + $0x4c0] sm:$0xf]  ;;  %v5061_v55 = vpack.c.bf16 %v34_v43, %v27_v42  ;;  %v3751_v59 = vor.u32 %v4602_v38, %v3750_v37  ;;  %1308 = vmatpush.bf16.msrb.mxu1 %v3735_v49  ;;  %v4420_v34 = vld [vmem:[%s7007_s1 + $0x64] sm:$0xf]  ;;  %v3179_v38 = vor.u32 %v4456_v26, %v3176_v27 }
  0x26   :  { %v4562_v52 = vld [vmem:[%s7007_s1 + $0x4cc] sm:$0xf0]  ;;  %v3718_v53 = vld [vmem:[%s7007_s1 + $0x5c0] sm:$0xf]  ;;  %v5072_v60 = vpack.c.bf16 %v37_v48, %v30_v47  ;;  %1274 = vmatmul.bf16.vlgmr.msra.gmra.mxu2 %v5059_v54  ;;  %v40_v37 = vld [vmem:[%s7008_s0 + $0x68] sm:$0xff]  ;;  %v3035_v43 = vor.u32 %v4420_v34, %v3032_v35 }
  0x27   :  { %v4594_v56 = vld [vmem:[%s7007_s1 + $0x5cc] sm:$0xf0]  ;;  %v35_v62 = vld [vmem:[%s7008_s0 + $0x40] sm:$0xff]  ;;  %v3591_v0 = vor.u32 %v4562_v52, %v3590_v51  ;;  %1336 = vmatpush.bf16.msrb.mxu3 %v3099_v50  ;;  %1246 = vmatmul.bf16.vlgmr.msra.gmra.mxu0 %v5061_v55  ;;  %v3016_v49 = vld [vmem:[%s7007_s1 + $0x50] sm:$0xf0]  ;;  %v3163_v51 = vor.u32 %v4452_v40, %v3160_v41 }
  0x28   :  { %v3719_v3 = vor.u32 %v4594_v56, %v3718_v53  ;;  %v3574_v5 = vld [vmem:[%s7007_s1 + $0x4a0] sm:$0xf]  ;;  %v4558_v6 = vld [vmem:[%s7007_s1 + $0x4ac] sm:$0xf0]  ;;  %v5097_v8 = vpack.c.bf16 %v35_v62, %v28_v61  ;;  %1329 = vmatpush.bf16.msrb.mxu2 %v3751_v59  ;;  %1288 = vmatmul.bf16.vlgmr.msra.gmra.mxu3 %v5072_v60  ;;  %v4416_v48 = vld [vmem:[%s7007_s1 + $0x44] sm:$0xf] }
  0x29   :  { %v3702_v7 = vld [vmem:[%s7007_s1 + $0x5a0] sm:$0xf]  ;;  %v4590_v9 = vld [vmem:[%s7007_s1 + $0x5ac] sm:$0xf0]  ;;  %1295 = vmatpush.bf16.msrb.mxu0 %v3591_v0  ;;  %v3575_v13 = vor.u32 %v4558_v6, %v3574_v5  ;;  %v4448_v53 = vld [vmem:[%s7007_s1 + $0x144] sm:$0xf]  ;;  %v3019_v58 = vor.u32 %v4416_v48, %v3016_v49 }
  0x2a   :  { %1309 = vmatpush.bf16.msrb.mxu1 %v3719_v3  ;;  %v3703_v16 = vor.u32 %v4590_v9, %v3702_v7  ;;  %v3558_v18 = vld [vmem:[%s7007_s1 + $0x480] sm:$0xf]  ;;  %v4554_v19 = vld [vmem:[%s7007_s1 + $0x48c] sm:$0xf0]  ;;  %v3144_v56 = vld [vmem:[%s7007_s1 + $0x150] sm:$0xf0] }
  0x2b   :  { %1337 = vmatpush.bf16.msrb.mxu3 %v3083_v4  ;;  %v3686_v20 = vld [vmem:[%s7007_s1 + $0x580] sm:$0xf]  ;;  %1260 = vmatmul.bf16.vlgmr.msra.gmra.mxu1 %v5097_v8  ;;  %v4586_v21 = vld [vmem:[%s7007_s1 + $0x58c] sm:$0xf0]  ;;  %v3559_v25 = vor.u32 %v4554_v19, %v3558_v18  ;;  %v4412_v0 = vld [vmem:[%s7007_s1 + $0x24] sm:$0xf]  ;;  %v3147_v4 = vor.u32 %v4448_v53, %v3144_v56 }
  0x2c   :  { %1350 = vmatpush.bf16.msra.mxu2 %v3227_v63  ;;  %v3687_v28 = vor.u32 %v4586_v21, %v3686_v20  ;;  %v3542_v30 = vld [vmem:[%s7007_s1 + $0x460] sm:$0xf]  ;;  %v4550_v31 = vld [vmem:[%s7007_s1 + $0x46c] sm:$0xf0]  ;;  %v3000_v1 = vld [vmem:[%s7007_s1 + $0x30] sm:$0xf0] }
  0x2d   :  { %1296 = vmatpush.bf16.msrb.mxu0 %v3575_v13  ;;  %v3670_v32 = vld [vmem:[%s7007_s1 + $0x560] sm:$0xf]  ;;  %v4582_v33 = vld [vmem:[%s7007_s1 + $0x56c] sm:$0xf0]  ;;  %v3543_v39 = vor.u32 %v4550_v31, %v3542_v30  ;;  %v4444_v2 = vld [vmem:[%s7007_s1 + $0x124] sm:$0xf]  ;;  %v3003_v11 = vor.u32 %v4412_v0, %v3000_v1 }
  0x2e   :  { %1310 = vmatpush.bf16.msrb.mxu1 %v3703_v16  ;;  %v33_v36 = vld [vmem:[%s7008_s0 + $0x30] sm:$0xff]  ;;  %v3671_v42 = vor.u32 %v4582_v33, %v3670_v32  ;;  %v3526_v44 = vld [vmem:[%s7007_s1 + $0x440] sm:$0xf]  ;;  %v4408_v13 = vld [vmem:[%s7007_s1 + $0x4] sm:$0xf] }
  0x2f   :  { %1338 = vmatpush.bf16.msrb.mxu3 %v3067_v17  ;;  %v4546_v45 = vld [vmem:[%s7007_s1 + $0x44c] sm:$0xf0]  ;;  %v3654_v46 = vld [vmem:[%s7007_s1 + $0x540] sm:$0xf]  ;;  %v5188_v50 = vpack.c.bf16 %v40_v37, %v33_v36  ;;  %v3128_v3 = vld [vmem:[%s7007_s1 + $0x130] sm:$0xf0] }
  0x30   :  { %1351 = vmatpush.bf16.msra.mxu2 %v3211_v12  ;;  %v4578_v47 = vld [vmem:[%s7007_s1 + $0x54c] sm:$0xf0]  ;;  %v3527_v52 = vor.u32 %v4546_v45, %v3526_v44  ;;  %v3510_v59 = vld [vmem:[%s7007_s1 + $0x420] sm:$0xf]  ;;  %v2984_v14 = vld [vmem:[%s7007_s1 + $0x10] sm:$0xf0]  ;;  %v3131_v21 = vor.u32 %v4444_v2, %v3128_v3 }
  0x31   :  { %1297 = vmatpush.bf16.msrb.mxu0 %v3559_v25  ;;  %v3655_v57 = vor.u32 %v4578_v47, %v3654_v46  ;;  %v4542_v61 = vld [vmem:[%s7007_s1 + $0x42c] sm:$0xf0]  ;;  %v3638_v62 = vld [vmem:[%s7007_s1 + $0x520] sm:$0xf]  ;;  %v4500_v15 = vld [vmem:[%s7007_s1 + $0x2e4] sm:$0xf]  ;;  %v2987_v27 = vor.u32 %v4408_v13, %v2984_v14 }
  0x32   :  { %1311 = vmatpush.bf16.msrb.mxu1 %v3687_v28  ;;  %v4574_v63 = vld [vmem:[%s7007_s1 + $0x52c] sm:$0xf0]  ;;  %v3511_v5 = vor.u32 %v4542_v61, %v3510_v59  ;;  %v3494_v6 = vld [vmem:[%s7007_s1 + $0x400] sm:$0xf]  ;;  %v3352_v16 = vld [vmem:[%s7007_s1 + $0x2f0] sm:$0xf0] }
  0x33   :  { %1339 = vmatpush.bf16.msrb.mxu3 %v3051_v29  ;;  %v4538_v7 = vld [vmem:[%s7007_s1 + $0x40c] sm:$0xf0]  ;;  %v3622_v9 = vld [vmem:[%s7007_s1 + $0x500] sm:$0xf]  ;;  %v3639_v10 = vor.u32 %v4574_v63, %v3638_v62  ;;  %v4532_v17 = vld [vmem:[%s7007_s1 + $0x3e4] sm:$0xf]  ;;  %v3355_v31 = vor.u32 %v4500_v15, %v3352_v16 }
  0x34   :  { %1352 = vmatpush.bf16.msra.mxu2 %v3195_v24  ;;  %v4570_v12 = vld [vmem:[%s7007_s1 + $0x50c] sm:$0xf0]  ;;  %v3480_v18 = vld [vmem:[%s7007_s1 + $0x3f0] sm:$0xf0]  ;;  %v4564_v19 = vld [vmem:[%s7007_s1 + $0x4e4] sm:$0xf]  ;;  %v3495_v22 = vor.u32 %v4538_v7, %v3494_v6 }
  0x35   :  { %1298 = vmatpush.bf16.msrb.mxu0 %v3543_v39  ;;  %v3608_v20 = vld [vmem:[%s7007_s1 + $0x4f0] sm:$0xf0]  ;;  %v31_v23 = vld [vmem:[%s7008_s0 + $0x20] sm:$0xff]  ;;  %v38_v24 = vld [vmem:[%s7008_s0 + $0x58] sm:$0xff]  ;;  %v3623_v26 = vor.u32 %v4570_v12, %v3622_v9  ;;  %v3483_v32 = vor.u32 %v4532_v17, %v3480_v18 }
  0x36   :  { %1312 = vmatpush.bf16.msrb.mxu1 %v3671_v42  ;;  %3764 = vmatmul.msk.bf16.vlgmr.msrb.gmra.mxu2 %vm1234_vm0, %v5188_v50  ;;  %v4440_v25 = vld [vmem:[%s7007_s1 + $0x104] sm:$0xf]  ;;  %v3112_v28 = vld [vmem:[%s7007_s1 + $0x110] sm:$0xf0]  ;;  %v32_v29 = vld [vmem:[%s7008_s0 + $0x28] sm:$0xff]  ;;  %v3611_v36 = vor.u32 %v4564_v19, %v3608_v20  ;;  %v5285_v37 = vpack.c.bf16 %v38_v24, %v31_v23 }
  0x37   :  { %1340 = vmatpush.bf16.msrb.mxu3 %v3035_v43  ;;  %v39_v30 = vld [vmem:[%s7008_s0 + $0x60] sm:$0xff]  ;;  %v3736_v34 = vld [vmem:[%s7007_s1 + $0x5f0] sm:$0xf0]  ;;  %v3115_v41 = vor.u32 %v4440_v25, %v3112_v28 }
  0x38   :  { %1353 = vmatpush.bf16.msra.mxu2 %v3179_v38  ;;  %v4596_v33 = vld [vmem:[%s7007_s1 + $0x5e4] sm:$0xf]  ;;  %v3336_v38 = vld [vmem:[%s7007_s1 + $0x2d0] sm:$0xf0]  ;;  %v5296_v42 = vpack.c.bf16 %v39_v30, %v32_v29 }
  0x39   :  { %1299 = vmatpush.bf16.msrb.mxu0 %v3527_v52  ;;  %v4496_v35 = vld [vmem:[%s7007_s1 + $0x2c4] sm:$0xf]  ;;  %v3464_v40 = vld [vmem:[%s7007_s1 + $0x3d0] sm:$0xf0]  ;;  %v3739_v45 = vor.u32 %v4596_v33, %v3736_v34 }
  0x3a   :  { %1313 = vmatpush.bf16.msrb.mxu1 %v3655_v57  ;;  %v4528_v39 = vld [vmem:[%s7007_s1 + $0x3c4] sm:$0xf]  ;;  %v3592_v44 = vld [vmem:[%s7007_s1 + $0x4d0] sm:$0xf0]  ;;  %v3339_v46 = vor.u32 %v4496_v35, %v3336_v38 }
  0x3b   :  { %1341 = vmatpush.bf16.msrb.mxu3 %v3019_v58  ;;  %v4560_v43 = vld [vmem:[%s7007_s1 + $0x4c4] sm:$0xf]  ;;  %v3467_v47 = vor.u32 %v4528_v39, %v3464_v40  ;;  %v3720_v49 = vld [vmem:[%s7007_s1 + $0x5d0] sm:$0xf0] }
  0x3c   :  { %1354 = vmatpush.bf16.msra.mxu2 %v3163_v51  ;;  %v4592_v48 = vld [vmem:[%s7007_s1 + $0x5c4] sm:$0xf]  ;;  %v3595_v52 = vor.u32 %v4560_v43, %v3592_v44  ;;  %v3320_v53 = vld [vmem:[%s7007_s1 + $0x2b0] sm:$0xf0] }
  0x3d   :  { %1300 = vmatpush.bf16.msrb.mxu0 %v3511_v5  ;;  %v4492_v51 = vld [vmem:[%s7007_s1 + $0x2a4] sm:$0xf]  ;;  %v3448_v57 = vld [vmem:[%s7007_s1 + $0x3b0] sm:$0xf0]  ;;  %v3723_v61 = vor.u32 %v4592_v48, %v3720_v49 }
  0x3e   :  { %1314 = vmatpush.bf16.msrb.mxu1 %v3639_v10  ;;  %v4524_v56 = vld [vmem:[%s7007_s1 + $0x3a4] sm:$0xf]  ;;  %v3576_v59 = vld [vmem:[%s7007_s1 + $0x4b0] sm:$0xf0]  ;;  %v3323_v62 = vor.u32 %v4492_v51, %v3320_v53 }
  0x3f   :  { %1342 = vmatpush.bf16.msrb.mxu3 %v3003_v11  ;;  %v4556_v58 = vld [vmem:[%s7007_s1 + $0x4a4] sm:$0xf]  ;;  %v3451_v63 = vor.u32 %v4524_v56, %v3448_v57  ;;  %v3704_v1 = vld [vmem:[%s7007_s1 + $0x5b0] sm:$0xf0] }
  0x40   :  { %1355 = vmatpush.bf16.msra.mxu2 %v3147_v4  ;;  %v4588_v0 = vld [vmem:[%s7007_s1 + $0x5a4] sm:$0xf]  ;;  %v3579_v3 = vor.u32 %v4556_v58, %v3576_v59  ;;  %v3304_v4 = vld [vmem:[%s7007_s1 + $0x290] sm:$0xf0] }
  0x41   :  { %1301 = vmatpush.bf16.msrb.mxu0 %v3495_v22  ;;  %v4488_v2 = vld [vmem:[%s7007_s1 + $0x284] sm:$0xf]  ;;  %v3432_v6 = vld [vmem:[%s7007_s1 + $0x390] sm:$0xf0]  ;;  %v3707_v10 = vor.u32 %v4588_v0, %v3704_v1  ;;  %v3102_v0 = vld [vmem:[%s7007_s1 + $0xe8] sm:$0xf] }
  0x42   :  { %1315 = vmatpush.bf16.msrb.mxu1 %v3623_v26  ;;  %v4520_v5 = vld [vmem:[%s7007_s1 + $0x384] sm:$0xf]  ;;  %v3560_v9 = vld [vmem:[%s7007_s1 + $0x490] sm:$0xf0]  ;;  %v3307_v11 = vor.u32 %v4488_v2, %v3304_v4  ;;  %v4439_v1 = vld [vmem:[%s7007_s1 + $0xf4] sm:$0xf0] }
  0x43   :  { %1343 = vmatpush.bf16.msrb.mxu3 %v2987_v27  ;;  %v4552_v7 = vld [vmem:[%s7007_s1 + $0x484] sm:$0xf]  ;;  %v3435_v12 = vor.u32 %v4520_v5, %v3432_v6  ;;  %v3688_v14 = vld [vmem:[%s7007_s1 + $0x590] sm:$0xf0]  ;;  %v3358_v5 = vld [vmem:[%s7007_s1 + $0x2e8] sm:$0xf] }
  0x44   :  { %1356 = vmatpush.bf16.msra.mxu2 %v3131_v21  ;;  %1302 = vmatmul.bf16.vlgmr.msrb.gmra.mxu0 %v5285_v37  ;;  %v4584_v13 = vld [vmem:[%s7007_s1 + $0x584] sm:$0xf]  ;;  %v3563_v16 = vor.u32 %v4552_v7, %v3560_v9  ;;  %v3288_v17 = vld [vmem:[%s7007_s1 + $0x270] sm:$0xf0]  ;;  %v4503_v6 = vld [vmem:[%s7007_s1 + $0x2f4] sm:$0xf0] }
  0x45   :  { %1364 = vmatpush.bf16.msra.mxu0 %v3355_v31  ;;  %1316 = vmatmul.bf16.vlgmr.msrb.gmra.mxu1 %v5296_v42  ;;  %v4484_v15 = vld [vmem:[%s7007_s1 + $0x264] sm:$0xf]  ;;  %v3416_v19 = vld [vmem:[%s7007_s1 + $0x370] sm:$0xf0]  ;;  %v3691_v22 = vor.u32 %v4584_v13, %v3688_v14  ;;  %v3103_v13 = vor.u32 %v4439_v1, %v3102_v0  ;;  %v3486_v14 = vld [vmem:[%s7007_s1 + $0x3e8] sm:$0xf] }
  0x46   :  { %1378 = vmatpush.bf16.msra.mxu1 %v3483_v32  ;;  %1344 = vmatmul.bf16.vlgmr.msrb.gmra.mxu3 %v5061_v55  ;;  %v4516_v18 = vld [vmem:[%s7007_s1 + $0x364] sm:$0xf]  ;;  %v3544_v21 = vld [vmem:[%s7007_s1 + $0x470] sm:$0xf0]  ;;  %v3291_v23 = vor.u32 %v4484_v15, %v3288_v17  ;;  %v4535_v15 = vld [vmem:[%s7007_s1 + $0x3f4] sm:$0xf0] }
  0x47   :  { %1392 = vmatpush.bf16.msra.mxu3 %v3611_v36  ;;  %v4548_v20 = vld [vmem:[%s7007_s1 + $0x464] sm:$0xf]  ;;  %v3419_v24 = vor.u32 %v4516_v18, %v3416_v19  ;;  %v3672_v26 = vld [vmem:[%s7007_s1 + $0x570] sm:$0xf0]  ;;  %v3230_v17 = vld [vmem:[%s7007_s1 + $0x1e8] sm:$0xf]  ;;  %v3359_v19 = vor.u32 %v4503_v6, %v3358_v5 }
  0x48   :  { %1357 = vmatpush.bf16.msra.mxu2 %v3115_v41  ;;  %v4580_v25 = vld [vmem:[%s7007_s1 + $0x564] sm:$0xf]  ;;  %v3547_v28 = vor.u32 %v4548_v20, %v3544_v21  ;;  %v3272_v29 = vld [vmem:[%s7007_s1 + $0x250] sm:$0xf0]  ;;  %v4471_v18 = vld [vmem:[%s7007_s1 + $0x1f4] sm:$0xf0] }
  0x49   :  { %1365 = vmatpush.bf16.msra.mxu0 %v3339_v46  ;;  %v4480_v27 = vld [vmem:[%s7007_s1 + $0x244] sm:$0xf]  ;;  %v3400_v31 = vld [vmem:[%s7007_s1 + $0x350] sm:$0xf0]  ;;  %v3675_v34 = vor.u32 %v4580_v25, %v3672_v26  ;;  %v3086_v21 = vld [vmem:[%s7007_s1 + $0xc8] sm:$0xf]  ;;  %v3231_v26 = vor.u32 %v4471_v18, %v3230_v17 }
  0x4a   :  { %1379 = vmatpush.bf16.msra.mxu1 %v3467_v47  ;;  %v4512_v30 = vld [vmem:[%s7007_s1 + $0x344] sm:$0xf]  ;;  %v3528_v33 = vld [vmem:[%s7007_s1 + $0x450] sm:$0xf0]  ;;  %v3275_v35 = vor.u32 %v4480_v27, %v3272_v29  ;;  %v4499_v25 = vld [vmem:[%s7007_s1 + $0x2d4] sm:$0xf0] }
  0x4b   :  { %1393 = vmatpush.bf16.msra.mxu3 %v3595_v52  ;;  %1358 = vmatmul.bf16.vlgmr.msra.gmra.mxu2 %v5097_v8  ;;  %v4544_v32 = vld [vmem:[%s7007_s1 + $0x444] sm:$0xf]  ;;  %v3403_v36 = vor.u32 %v4512_v30, %v3400_v31  ;;  %v3656_v39 = vld [vmem:[%s7007_s1 + $0x550] sm:$0xf0]  ;;  %v3470_v27 = vld [vmem:[%s7007_s1 + $0x3c8] sm:$0xf] }
  0x4c   :  { %1406 = vmatpush.bf16.msrb.mxu2 %v3739_v45  ;;  %v4576_v38 = vld [vmem:[%s7007_s1 + $0x544] sm:$0xf]  ;;  %v3531_v41 = vor.u32 %v4544_v32, %v3528_v33  ;;  %v3256_v43 = vld [vmem:[%s7007_s1 + $0x230] sm:$0xf0]  ;;  %v3214_v30 = vld [vmem:[%s7007_s1 + $0x1c8] sm:$0xf] }
  0x4d   :  { %1366 = vmatpush.bf16.msra.mxu0 %v3323_v62  ;;  %v4476_v40 = vld [vmem:[%s7007_s1 + $0x224] sm:$0xf]  ;;  %v3384_v45 = vld [vmem:[%s7007_s1 + $0x330] sm:$0xf0]  ;;  %v3659_v48 = vor.u32 %v4576_v38, %v3656_v39  ;;  %v4467_v31 = vld [vmem:[%s7007_s1 + $0x1d4] sm:$0xf0] }
  0x4e   :  { %1380 = vmatpush.bf16.msra.mxu1 %v3451_v63  ;;  %v4508_v44 = vld [vmem:[%s7007_s1 + $0x324] sm:$0xf]  ;;  %v3512_v47 = vld [vmem:[%s7007_s1 + $0x430] sm:$0xf0]  ;;  %v3259_v52 = vor.u32 %v4476_v40, %v3256_v43  ;;  %v3070_v33 = vld [vmem:[%s7007_s1 + $0xa8] sm:$0xf]  ;;  %v3215_v39 = vor.u32 %v4467_v31, %v3214_v30 }
  0x4f   :  { %1394 = vmatpush.bf16.msra.mxu3 %v3579_v3  ;;  %v4540_v46 = vld [vmem:[%s7007_s1 + $0x424] sm:$0xf]  ;;  %v3640_v51 = vld [vmem:[%s7007_s1 + $0x530] sm:$0xf0]  ;;  %v3387_v53 = vor.u32 %v4508_v44, %v3384_v45  ;;  %v4495_v38 = vld [vmem:[%s7007_s1 + $0x2b4] sm:$0xf0] }
  0x50   :  { %1407 = vmatpush.bf16.msrb.mxu2 %v3723_v61  ;;  %v4572_v49 = vld [vmem:[%s7007_s1 + $0x524] sm:$0xf]  ;;  %v3240_v57 = vld [vmem:[%s7007_s1 + $0x210] sm:$0xf0]  ;;  %v3515_v59 = vor.u32 %v4540_v46, %v3512_v47  ;;  %v3454_v40 = vld [vmem:[%s7007_s1 + $0x3a8] sm:$0xf] }
  0x51   :  { %1367 = vmatpush.bf16.msra.mxu0 %v3307_v11  ;;  %v4472_v56 = vld [vmem:[%s7007_s1 + $0x204] sm:$0xf]  ;;  %v3368_v61 = vld [vmem:[%s7007_s1 + $0x310] sm:$0xf0]  ;;  %v3643_v3 = vor.u32 %v4572_v49, %v3640_v51  ;;  %v3198_v44 = vld [vmem:[%s7007_s1 + $0x1a8] sm:$0xf] }
  0x52   :  { %1381 = vmatpush.bf16.msra.mxu1 %v3435_v12  ;;  %v4504_v58 = vld [vmem:[%s7007_s1 + $0x304] sm:$0xf]  ;;  %v3496_v63 = vld [vmem:[%s7007_s1 + $0x410] sm:$0xf0]  ;;  %v3243_v7 = vor.u32 %v4472_v56, %v3240_v57  ;;  %v4463_v45 = vld [vmem:[%s7007_s1 + $0x1b4] sm:$0xf0] }
  0x53   :  { %1395 = vmatpush.bf16.msra.mxu3 %v3563_v16  ;;  %v4536_v62 = vld [vmem:[%s7007_s1 + $0x404] sm:$0xf]  ;;  %v3752_v4 = vld [vmem:[%s7007_s1 + $0x610] sm:$0xf0]  ;;  %v3371_v9 = vor.u32 %v4504_v58, %v3368_v61  ;;  %v3054_v47 = vld [vmem:[%s7007_s1 + $0x88] sm:$0xf] }
  0x54   :  { %1408 = vmatpush.bf16.msrb.mxu2 %v3707_v10  ;;  %v4600_v2 = vld [vmem:[%s7007_s1 + $0x604] sm:$0xf]  ;;  %v3624_v11 = vld [vmem:[%s7007_s1 + $0x510] sm:$0xf0]  ;;  %v3499_v12 = vor.u32 %v4536_v62, %v3496_v63  ;;  %v3310_v51 = vld [vmem:[%s7007_s1 + $0x288] sm:$0xf] }
  0x55   :  { %1368 = vmatpush.bf16.msra.mxu0 %v3291_v23  ;;  %v4568_v10 = vld [vmem:[%s7007_s1 + $0x504] sm:$0xf]  ;;  %v3755_v16 = vor.u32 %v4600_v2, %v3752_v4  ;;  %v3487_v23 = vor.u32 %v4535_v15, %v3486_v14  ;;  %v3438_v56 = vld [vmem:[%s7007_s1 + $0x388] sm:$0xf]  ;;  %v4523_v57 = vld [vmem:[%s7007_s1 + $0x394] sm:$0xf0] }
  0x56   :  { %1382 = vmatpush.bf16.msra.mxu1 %v3419_v24  ;;  %v3627_v20 = vor.u32 %v4568_v10, %v3624_v11  ;;  %v3342_v24 = vld [vmem:[%s7007_s1 + $0x2c8] sm:$0xf]  ;;  %v4459_v61 = vld [vmem:[%s7007_s1 + $0x194] sm:$0xf0]  ;;  %v3439_v1 = vor.u32 %v4523_v57, %v3438_v56  ;;  %v4437_v56 = vld [vmem:[%s7007_s1 + $0xec] sm:$0xf] }
  0x57   :  { %1396 = vmatpush.bf16.msra.mxu3 %v3547_v28  ;;  %v4531_v28 = vld [vmem:[%s7007_s1 + $0x3d4] sm:$0xf0]  ;;  %v3343_v32 = vor.u32 %v4499_v25, %v3342_v24  ;;  %v3038_v63 = vld [vmem:[%s7007_s1 + $0x68] sm:$0xf]  ;;  %v3104_v57 = vld [vmem:[%s7007_s1 + $0xf8] sm:$0xf0] }
  0x58   :  { %1409 = vmatpush.bf16.msrb.mxu2 %v3691_v22  ;;  %v4435_v22 = vld [vmem:[%s7007_s1 + $0xd4] sm:$0xf0]  ;;  %v3294_v2 = vld [vmem:[%s7007_s1 + $0x268] sm:$0xf] }
  0x59   :  { %1369 = vmatpush.bf16.msra.mxu0 %v3275_v35  ;;  %v3087_v29 = vor.u32 %v4435_v22, %v3086_v21  ;;  %v3471_v35 = vor.u32 %v4531_v28, %v3470_v27  ;;  %v4423_v0 = vld [vmem:[%s7007_s1 + $0x74] sm:$0xf0]  ;;  %v3422_v5 = vld [vmem:[%s7007_s1 + $0x368] sm:$0xf] }
  0x5a   :  { %1383 = vmatpush.bf16.msra.mxu1 %v3403_v36  ;;  %v3326_v36 = vld [vmem:[%s7007_s1 + $0x2a8] sm:$0xf]  ;;  %v4519_v6 = vld [vmem:[%s7007_s1 + $0x374] sm:$0xf0] }
  0x5b   :  { %1397 = vmatpush.bf16.msra.mxu3 %v3531_v41  ;;  %v4527_v41 = vld [vmem:[%s7007_s1 + $0x3b4] sm:$0xf0]  ;;  %v3327_v46 = vor.u32 %v4495_v38, %v3326_v36  ;;  %v3423_v14 = vor.u32 %v4519_v6, %v3422_v5  ;;  %v3278_v15 = vld [vmem:[%s7007_s1 + $0x248] sm:$0xf]  ;;  %v3107_v6 = vor.u32 %v4437_v56, %v3104_v57 }
  0x5c   :  { %1410 = vmatpush.bf16.msrb.mxu2 %v3675_v34  ;;  %v4431_v34 = vld [vmem:[%s7007_s1 + $0xb4] sm:$0xf0]  ;;  %v3455_v49 = vor.u32 %v4527_v41, %v3454_v40  ;;  %v3406_v18 = vld [vmem:[%s7007_s1 + $0x348] sm:$0xf] }
  0x5d   :  { %1370 = vmatpush.bf16.msra.mxu0 %v3259_v52  ;;  %v3071_v43 = vor.u32 %v4431_v34, %v3070_v33  ;;  %v4491_v52 = vld [vmem:[%s7007_s1 + $0x294] sm:$0xf0]  ;;  %v3150_v21 = vld [vmem:[%s7007_s1 + $0x148] sm:$0xf] }
  0x5e   :  { %1384 = vmatpush.bf16.msra.mxu1 %v3387_v53  ;;  %v3199_v53 = vor.u32 %v4463_v45, %v3198_v44  ;;  %v3311_v62 = vor.u32 %v4491_v52, %v3310_v51  ;;  %v4455_v10 = vld [vmem:[%s7007_s1 + $0x174] sm:$0xf0]  ;;  %v3006_v24 = vld [vmem:[%s7007_s1 + $0x28] sm:$0xf] }
  0x5f   :  { %1398 = vmatpush.bf16.msra.mxu3 %v3515_v59  ;;  %v3182_v59 = vld [vmem:[%s7007_s1 + $0x188] sm:$0xf]  ;;  %v4451_v22 = vld [vmem:[%s7007_s1 + $0x154] sm:$0xf0] }
  0x60   :  { %1411 = vmatpush.bf16.msrb.mxu2 %v3659_v48  ;;  %v4427_v48 = vld [vmem:[%s7007_s1 + $0x94] sm:$0xf0]  ;;  %v3183_v4 = vor.u32 %v4459_v61, %v3182_v59  ;;  %v3262_v27 = vld [vmem:[%s7007_s1 + $0x228] sm:$0xf] }
  0x61   :  { %1371 = vmatpush.bf16.msra.mxu0 %v3243_v7  ;;  %v3055_v58 = vor.u32 %v4427_v48, %v3054_v47  ;;  %v3039_v7 = vor.u32 %v4423_v0, %v3038_v63  ;;  %v4415_v25 = vld [vmem:[%s7007_s1 + $0x34] sm:$0xf0]  ;;  %v3390_v30 = vld [vmem:[%s7007_s1 + $0x328] sm:$0xf] }
  0x62   :  { %1385 = vmatpush.bf16.msra.mxu1 %v3371_v9  ;;  %v3166_v9 = vld [vmem:[%s7007_s1 + $0x168] sm:$0xf]  ;;  %v4479_v28 = vld [vmem:[%s7007_s1 + $0x234] sm:$0xf0] }
  0x63   :  { %1399 = vmatpush.bf16.msra.mxu3 %v3499_v12  ;;  %v3022_v12 = vld [vmem:[%s7007_s1 + $0x48] sm:$0xf]  ;;  %v3167_v17 = vor.u32 %v4455_v10, %v3166_v9  ;;  %v4511_v31 = vld [vmem:[%s7007_s1 + $0x334] sm:$0xf0]  ;;  %v3263_v36 = vor.u32 %v4479_v28, %v3262_v27  ;;  %v4433_v9 = vld [vmem:[%s7007_s1 + $0xcc] sm:$0xf] }
  0x64   :  { %1412 = vmatpush.bf16.msrb.mxu2 %v3643_v3  ;;  %1372 = vmatmul.bf16.vlgmr.msra.gmra.mxu0 %v5059_v54  ;;  %v4487_v3 = vld [vmem:[%s7007_s1 + $0x274] sm:$0xf0]  ;;  %v3134_v33 = vld [vmem:[%s7007_s1 + $0x128] sm:$0xf]  ;;  %v3391_v41 = vor.u32 %v4511_v31, %v3390_v30  ;;  %v3088_v10 = vld [vmem:[%s7007_s1 + $0xd8] sm:$0xf0] }
  0x65   :  { %1462 = vmatpush.bf16.msrb.mxu0 %v3359_v19  ;;  %1386 = vmatmul.bf16.vlgmr.msra.gmra.mxu1 %v5072_v60  ;;  %v3295_v11 = vor.u32 %v4487_v3, %v3294_v2  ;;  %v4515_v19 = vld [vmem:[%s7007_s1 + $0x354] sm:$0xf0]  ;;  %v3246_v44 = vld [vmem:[%s7007_s1 + $0x208] sm:$0xf]  ;;  %v4469_v3 = vld [vmem:[%s7007_s1 + $0x1ec] sm:$0xf] }
  0x66   :  { %1434 = vmatpush.bf16.msrb.mxu1 %v3103_v13  ;;  %1400 = vmatmul.bf16.vlgmr.msra.gmra.mxu3 %v5285_v37  ;;  %v4419_v13 = vld [vmem:[%s7007_s1 + $0x54] sm:$0xf0]  ;;  %v3742_v61 = vld [vmem:[%s7007_s1 + $0x5e8] sm:$0xf]  ;;  %v3200_v30 = vld [vmem:[%s7007_s1 + $0x1b8] sm:$0xf0] }
  0x67   :  { %1427 = vmatpush.bf16.msrb.mxu3 %v3755_v16  ;;  %v4483_v16 = vld [vmem:[%s7007_s1 + $0x254] sm:$0xf0]  ;;  %v3598_v63 = vld [vmem:[%s7007_s1 + $0x4c8] sm:$0xf] }
  0x68   :  { %1413 = vmatpush.bf16.msrb.mxu2 %v3627_v20  ;;  %v3023_v20 = vor.u32 %v4419_v13, %v3022_v12  ;;  %v4447_v34 = vld [vmem:[%s7007_s1 + $0x134] sm:$0xf0]  ;;  %v3726_v13 = vld [vmem:[%s7007_s1 + $0x5c8] sm:$0xf] }
  0x69   :  { %1463 = vmatpush.bf16.msrb.mxu0 %v3343_v32  ;;  %v3007_v32 = vor.u32 %v4415_v25, %v3006_v24  ;;  %v4411_v38 = vld [vmem:[%s7007_s1 + $0x14] sm:$0xf0]  ;;  %v3135_v47 = vor.u32 %v4447_v34, %v3134_v33  ;;  %v3710_v25 = vld [vmem:[%s7007_s1 + $0x5a8] sm:$0xf]  ;;  %v4425_v33 = vld [vmem:[%s7007_s1 + $0x8c] sm:$0xf] }
  0x6a   :  { %1435 = vmatpush.bf16.msrb.mxu1 %v3087_v29  ;;  %v3151_v29 = vor.u32 %v4451_v22, %v3150_v21  ;;  %v4567_v40 = vld [vmem:[%s7007_s1 + $0x4f4] sm:$0xf0]  ;;  %v4429_v21 = vld [vmem:[%s7007_s1 + $0xac] sm:$0xf]  ;;  %v3072_v22 = vld [vmem:[%s7007_s1 + $0xb8] sm:$0xf0] }
  0x6b   :  { %1448 = vmatpush.bf16.msra.mxu3 %v3231_v26  ;;  %1414 = vmatmul.bf16.vlgmr.msrb.gmra.mxu2 %v5296_v42  ;;  %v3407_v26 = vor.u32 %v4515_v19, %v3406_v18  ;;  %v4475_v45 = vld [vmem:[%s7007_s1 + $0x214] sm:$0xf0]  ;;  %v3216_v18 = vld [vmem:[%s7007_s1 + $0x1d8] sm:$0xf0]  ;;  %v3091_v19 = vor.u32 %v4433_v9, %v3088_v10  ;;  %v3566_v27 = vld [vmem:[%s7007_s1 + $0x488] sm:$0xf]  ;;  %v3075_v31 = vor.u32 %v4429_v21, %v3072_v22 }
  0x6c   :  { %1476 = vmatpush.bf16.msra.mxu2 %v3487_v23  ;;  %v3279_v23 = vor.u32 %v4483_v16, %v3278_v15  ;;  %v4507_v48 = vld [vmem:[%s7007_s1 + $0x314] sm:$0xf0]  ;;  %v3247_v59 = vor.u32 %v4475_v45, %v3246_v44  ;;  %v3582_v15 = vld [vmem:[%s7007_s1 + $0x4a8] sm:$0xf]  ;;  %v3056_v34 = vld [vmem:[%s7007_s1 + $0x98] sm:$0xf0] }
  0x6d   :  { %1464 = vmatpush.bf16.msrb.mxu0 %v3327_v46  ;;  %v3374_v46 = vld [vmem:[%s7007_s1 + $0x308] sm:$0xf]  ;;  %v4603_v51 = vld [vmem:[%s7007_s1 + $0x614] sm:$0xf0]  ;;  %v3184_v44 = vld [vmem:[%s7007_s1 + $0x198] sm:$0xf0]  ;;  %v3059_v45 = vor.u32 %v4425_v33, %v3056_v34 }
  0x6e   :  { %1436 = vmatpush.bf16.msrb.mxu1 %v3071_v43  ;;  %v3118_v43 = vld [vmem:[%s7007_s1 + $0x108] sm:$0xf]  ;;  %v3375_v0 = vor.u32 %v4507_v48, %v3374_v46  ;;  %v4559_v16 = vld [vmem:[%s7007_s1 + $0x4b4] sm:$0xf0]  ;;  %v3040_v48 = vld [vmem:[%s7007_s1 + $0x78] sm:$0xf0] }
  0x6f   :  { %1449 = vmatpush.bf16.msra.mxu3 %v3215_v39  ;;  %v3614_v39 = vld [vmem:[%s7007_s1 + $0x4e8] sm:$0xf]  ;;  %v4555_v28 = vld [vmem:[%s7007_s1 + $0x494] sm:$0xf0]  ;;  %v3152_v9 = vld [vmem:[%s7007_s1 + $0x158] sm:$0xf0] }
  0x70   :  { %1477 = vmatpush.bf16.msra.mxu2 %v3471_v35  ;;  %v2990_v35 = vld [vmem:[%s7007_s1 + $0x8] sm:$0xf]  ;;  %v4547_v57 = vld [vmem:[%s7007_s1 + $0x454] sm:$0xf0]  ;;  %v3136_v21 = vld [vmem:[%s7007_s1 + $0x138] sm:$0xf0] }
  0x71   :  { %1465 = vmatpush.bf16.msrb.mxu0 %v3311_v62  ;;  %v2991_v52 = vor.u32 %v4411_v38, %v2990_v35  ;;  %v4599_v62 = vld [vmem:[%s7007_s1 + $0x5f4] sm:$0xf0]  ;;  %v3567_v35 = vor.u32 %v4555_v28, %v3566_v27  ;;  %v3694_v38 = vld [vmem:[%s7007_s1 + $0x588] sm:$0xf]  ;;  %v4409_v27 = vld [vmem:[%s7007_s1 + $0xc] sm:$0xf] }
  0x72   :  { %1437 = vmatpush.bf16.msrb.mxu1 %v3055_v58  ;;  %v3615_v58 = vor.u32 %v4567_v40, %v3614_v39  ;;  %v4587_v39 = vld [vmem:[%s7007_s1 + $0x594] sm:$0xf0]  ;;  %v3550_v40 = vld [vmem:[%s7007_s1 + $0x468] sm:$0xf]  ;;  %v2992_v28 = vld [vmem:[%s7007_s1 + $0x18] sm:$0xf0] }
  0x73   :  { %1450 = vmatpush.bf16.msra.mxu3 %v3199_v53  ;;  %v4443_v53 = vld [vmem:[%s7007_s1 + $0x114] sm:$0xf0]  ;;  %v3695_v46 = vor.u32 %v4587_v39, %v3694_v38  ;;  %v3534_v56 = vld [vmem:[%s7007_s1 + $0x448] sm:$0xf]  ;;  %v3488_v33 = vld [vmem:[%s7007_s1 + $0x3f8] sm:$0xf0]  ;;  %v2995_v39 = vor.u32 %v4409_v27, %v2992_v28 }
  0x74   :  { %1478 = vmatpush.bf16.msra.mxu2 %v3455_v49  ;;  %v3758_v49 = vld [vmem:[%s7007_s1 + $0x608] sm:$0xf]  ;;  %v3119_v5 = vor.u32 %v4443_v53, %v3118_v43  ;;  %v4457_v43 = vld [vmem:[%s7007_s1 + $0x18c] sm:$0xf]  ;;  %v4583_v53 = vld [vmem:[%s7007_s1 + $0x574] sm:$0xf0] }
  0x75   :  { %1466 = vmatpush.bf16.msrb.mxu0 %v3295_v11  ;;  %v3759_v2 = vor.u32 %v4603_v51, %v3758_v49  ;;  %v3187_v51 = vor.u32 %v4457_v43, %v3184_v44  ;;  %v4497_v38 = vld [vmem:[%s7007_s1 + $0x2cc] sm:$0xf]  ;;  %v3120_v43 = vld [vmem:[%s7007_s1 + $0x118] sm:$0xf0] }
  0x76   :  { %1438 = vmatpush.bf16.msrb.mxu1 %v3039_v7  ;;  %3765 = vmatmul.msk.bf16.vlgmr.msrb.gmra.mxu3 %vm1234_vm0, %v5188_v50  ;;  %v3743_v7 = vor.u32 %v4599_v62, %v3742_v61  ;;  %v3424_v27 = vld [vmem:[%s7007_s1 + $0x378] sm:$0xf0]  ;;  %v4549_v28 = vld [vmem:[%s7007_s1 + $0x46c] sm:$0xf] }
  0x77   :  { %1451 = vmatpush.bf16.msra.mxu3 %v3183_v4  ;;  %v3232_v4 = vld [vmem:[%s7007_s1 + $0x1f8] sm:$0xf0] }
  0x78   :  { %1479 = vmatpush.bf16.msra.mxu2 %v3439_v1  ;;  %v4563_v1 = vld [vmem:[%s7007_s1 + $0x4d4] sm:$0xf0]  ;;  %v3235_v12 = vor.u32 %v4469_v3, %v3232_v4  ;;  %v3662_v3 = vld [vmem:[%s7007_s1 + $0x548] sm:$0xf] }
  0x79   :  { %1467 = vmatpush.bf16.msrb.mxu0 %v3279_v23  ;;  %v3599_v11 = vor.u32 %v4563_v1, %v3598_v63  ;;  %v3583_v23 = vor.u32 %v4559_v16, %v3582_v15  ;;  %v4417_v63 = vld [vmem:[%s7007_s1 + $0x4c] sm:$0xf]  ;;  %v3535_v1 = vor.u32 %v4547_v57, %v3534_v56  ;;  %v4579_v4 = vld [vmem:[%s7007_s1 + $0x554] sm:$0xf0]  ;;  %v3646_v16 = vld [vmem:[%s7007_s1 + $0x528] sm:$0xf] }
  0x7a   :  { %1439 = vmatpush.bf16.msrb.mxu1 %v3023_v20  ;;  %v4561_v56 = vld [vmem:[%s7007_s1 + $0x4cc] sm:$0xf]  ;;  %v3600_v57 = vld [vmem:[%s7007_s1 + $0x4d8] sm:$0xf0] }
  0x7b   :  { %1452 = vmatpush.bf16.msra.mxu3 %v3167_v17  ;;  %v4465_v17 = vld [vmem:[%s7007_s1 + $0x1cc] sm:$0xf] }
  0x7c   :  { %1480 = vmatpush.bf16.msra.mxu2 %v3423_v14  ;;  %v4595_v14 = vld [vmem:[%s7007_s1 + $0x5d4] sm:$0xf0]  ;;  %v3219_v24 = vor.u32 %v4465_v17, %v3216_v18  ;;  %v3502_v18 = vld [vmem:[%s7007_s1 + $0x408] sm:$0xf] }
  0x7d   :  { %1468 = vmatpush.bf16.msrb.mxu0 %v3263_v36  ;;  %v3727_v20 = vor.u32 %v4595_v14, %v3726_v13  ;;  %v3008_v13 = vld [vmem:[%s7007_s1 + $0x38] sm:$0xf0]  ;;  %v4575_v17 = vld [vmem:[%s7007_s1 + $0x534] sm:$0xf0] }
  0x7e   :  { %1440 = vmatpush.bf16.msrb.mxu1 %v3007_v32 }
  0x7f   :  { %1453 = vmatpush.bf16.msra.mxu3 %v3151_v29  ;;  %v4461_v29 = vld [vmem:[%s7007_s1 + $0x1ac] sm:$0xf] }
  0x80   :  { %1481 = vmatpush.bf16.msra.mxu2 %v3407_v26  ;;  %v4591_v26 = vld [vmem:[%s7007_s1 + $0x5b4] sm:$0xf0]  ;;  %v3203_v36 = vor.u32 %v4461_v29, %v3200_v30 }
  0x81   :  { %1469 = vmatpush.bf16.msrb.mxu0 %v3247_v59  ;;  %v3711_v32 = vor.u32 %v4591_v26, %v3710_v25  ;;  %v3168_v59 = vld [vmem:[%s7007_s1 + $0x178] sm:$0xf0]  ;;  %v3647_v25 = vor.u32 %v4575_v17, %v3646_v16  ;;  %v3630_v26 = vld [vmem:[%s7007_s1 + $0x508] sm:$0xf]  ;;  %v4553_v17 = vld [vmem:[%s7007_s1 + $0x48c] sm:$0xf] }
  0x82   :  { %1441 = vmatpush.bf16.msrb.mxu1 %v2991_v52  ;;  %v3678_v52 = vld [vmem:[%s7007_s1 + $0x568] sm:$0xf] }
  0x83   :  { %1454 = vmatpush.bf16.msra.mxu3 %v3135_v47  ;;  %v4421_v47 = vld [vmem:[%s7007_s1 + $0x6c] sm:$0xf]  ;;  %v3679_v62 = vor.u32 %v4583_v53, %v3678_v52  ;;  %v3472_v53 = vld [vmem:[%s7007_s1 + $0x3d8] sm:$0xf0] }
  0x84   :  { %1482 = vmatpush.bf16.msra.mxu2 %v3391_v41  ;;  %1470 = vmatmul.bf16.vlgmr.msrb.gmra.mxu0 %v5059_v54  ;;  %v4551_v41 = vld [vmem:[%s7007_s1 + $0x474] sm:$0xf0]  ;;  %v3043_v61 = vor.u32 %v4421_v47, %v3040_v48 }
  0x85   :  { %1525 = vmatpush.bf16.msra.mxu0 %v3759_v2  ;;  %1442 = vmatmul.bf16.vlgmr.msrb.gmra.mxu1 %v5061_v55  ;;  %v3551_v49 = vor.u32 %v4551_v41, %v3550_v40  ;;  %v3344_v40 = vld [vmem:[%s7007_s1 + $0x2d8] sm:$0xf0]  ;;  %v4441_v41 = vld [vmem:[%s7007_s1 + $0x10c] sm:$0xf] }
  0x86   :  { %1490 = vmatpush.bf16.msra.mxu1 %v3615_v58  ;;  %v4453_v58 = vld [vmem:[%s7007_s1 + $0x16c] sm:$0xf]  ;;  %v3123_v52 = vor.u32 %v4441_v41, %v3120_v43  ;;  %v3536_v43 = vld [vmem:[%s7007_s1 + $0x458] sm:$0xf0] }
  0x87   :  { %1455 = vmatpush.bf16.msra.mxu3 %v3119_v5  ;;  %v3171_v2 = vor.u32 %v4453_v58, %v3168_v59  ;;  %v3518_v5 = vld [vmem:[%s7007_s1 + $0x428] sm:$0xf]  ;;  %v4493_v59 = vld [vmem:[%s7007_s1 + $0x2ac] sm:$0xf] }
  0x88   :  { %1483 = vmatpush.bf16.msra.mxu2 %v3375_v0  ;;  %v3024_v0 = vld [vmem:[%s7007_s1 + $0x58] sm:$0xf0]  ;;  %v4545_v41 = vld [vmem:[%s7007_s1 + $0x44c] sm:$0xf] }
  0x89   :  { %1546 = vmatpush.bf16.msrb.mxu0 %v3235_v12  ;;  %v3027_v10 = vor.u32 %v4417_v63, %v3024_v0  ;;  %v4413_v12 = vld [vmem:[%s7007_s1 + $0x2c] sm:$0xf]  ;;  %v3728_v63 = vld [vmem:[%s7007_s1 + $0x5d8] sm:$0xf0] }
  0x8a   :  { %1491 = vmatpush.bf16.msra.mxu1 %v3599_v11  ;;  %1456 = vmatmul.bf16.vlgmr.msra.gmra.mxu3 %v5097_v8  ;;  %v3663_v11 = vor.u32 %v4579_v4, %v3662_v3  ;;  %v3011_v22 = vor.u32 %v4413_v12, %v3008_v13  ;;  %v3456_v4 = vld [vmem:[%s7007_s1 + $0x3b8] sm:$0xf0] }
  0x8b   :  { %1504 = vmatpush.bf16.msrb.mxu3 %v3743_v7  ;;  %1484 = vmatmul.bf16.vlgmr.msra.gmra.mxu2 %v5072_v60  ;;  %v4449_v7 = vld [vmem:[%s7007_s1 + $0x14c] sm:$0xf]  ;;  %v3712_v12 = vld [vmem:[%s7007_s1 + $0x5b8] sm:$0xf0] }
  0x8c   :  { %1532 = vmatpush.bf16.msrb.mxu2 %v3107_v6  ;;  %v4543_v6 = vld [vmem:[%s7007_s1 + $0x434] sm:$0xf0]  ;;  %v3155_v15 = vor.u32 %v4449_v7, %v3152_v9  ;;  %v4489_v9 = vld [vmem:[%s7007_s1 + $0x28c] sm:$0xf] }
  0x8d   :  { %1547 = vmatpush.bf16.msrb.mxu0 %v3219_v24  ;;  %v3519_v14 = vor.u32 %v4543_v6, %v3518_v5  ;;  %v3360_v24 = vld [vmem:[%s7007_s1 + $0x2f8] sm:$0xf0]  ;;  %v4557_v5 = vld [vmem:[%s7007_s1 + $0x4ac] sm:$0xf] }
  0x8e   :  { %1492 = vmatpush.bf16.msra.mxu1 %v3583_v23  ;;  %v4501_v23 = vld [vmem:[%s7007_s1 + $0x2ec] sm:$0xf]  ;;  %v3584_v6 = vld [vmem:[%s7007_s1 + $0x4b8] sm:$0xf0] }
  0x8f   :  { %1505 = vmatpush.bf16.msrb.mxu3 %v3727_v20  ;;  %v4445_v20 = vld [vmem:[%s7007_s1 + $0x12c] sm:$0xf]  ;;  %v3363_v34 = vor.u32 %v4501_v23, %v3360_v24  ;;  %v3696_v23 = vld [vmem:[%s7007_s1 + $0x598] sm:$0xf0] }
  0x90   :  { %1533 = vmatpush.bf16.msrb.mxu2 %v3091_v19  ;;  %v4539_v19 = vld [vmem:[%s7007_s1 + $0x414] sm:$0xf0]  ;;  %v3139_v30 = vor.u32 %v4445_v20, %v3136_v21  ;;  %v4485_v20 = vld [vmem:[%s7007_s1 + $0x26c] sm:$0xf]  ;;  %v3296_v21 = vld [vmem:[%s7007_s1 + $0x278] sm:$0xf0] }
  0x91   :  { %1548 = vmatpush.bf16.msrb.mxu0 %v3203_v36  ;;  %v3503_v29 = vor.u32 %v4539_v19, %v3502_v18  ;;  %v3616_v36 = vld [vmem:[%s7007_s1 + $0x4f8] sm:$0xf0] }
  0x92   :  { %1493 = vmatpush.bf16.msra.mxu1 %v3567_v35  ;;  %v4565_v35 = vld [vmem:[%s7007_s1 + $0x4ec] sm:$0xf]  ;;  %v3568_v18 = vld [vmem:[%s7007_s1 + $0x498] sm:$0xf0] }
  0x93   :  { %1506 = vmatpush.bf16.msrb.mxu3 %v3711_v32  ;;  %v4533_v32 = vld [vmem:[%s7007_s1 + $0x3ec] sm:$0xf]  ;;  %v3619_v48 = vor.u32 %v4565_v35, %v3616_v36  ;;  %v3571_v24 = vor.u32 %v4553_v17, %v3568_v18 }
  0x94   :  { %1534 = vmatpush.bf16.msrb.mxu2 %v3075_v31  ;;  %3766 = vmatmul.msk.bf16.vlgmr.msra.gmra.mxu0 %vm1234_vm0, %v5188_v50  ;;  %v4571_v31 = vld [vmem:[%s7007_s1 + $0x514] sm:$0xf0]  ;;  %v3491_v47 = vor.u32 %v4533_v32, %v3488_v33  ;;  %v3280_v32 = vld [vmem:[%s7007_s1 + $0x258] sm:$0xf0]  ;;  %v4581_v33 = vld [vmem:[%s7007_s1 + $0x56c] sm:$0xf] }
  0x95   :  { %1549 = vmatpush.bf16.msrb.mxu0 %v3187_v51  ;;  %v3631_v44 = vor.u32 %v4571_v31, %v3630_v26  ;;  %v3347_v51 = vor.u32 %v4497_v38, %v3344_v40  ;;  %v3299_v26 = vor.u32 %v4485_v20, %v3296_v21  ;;  %v4481_v31 = vld [vmem:[%s7007_s1 + $0x24c] sm:$0xf]  ;;  %v3408_v40 = vld [vmem:[%s7007_s1 + $0x358] sm:$0xf0]  ;;  %v4010_v20 = vld [vmem:[%s7010_s3 + $0x1e0] sm:$0xf] }
  0x96   :  { %1494 = vmatpush.bf16.msra.mxu1 %v3551_v49  ;;  %v4529_v49 = vld [vmem:[%s7007_s1 + $0x3cc] sm:$0xf]  ;;  %v4666_v21 = vld [vmem:[%s7010_s3 + $0x1ec] sm:$0xf0] }
  0x97   :  { %1507 = vmatpush.bf16.msrb.mxu3 %v3695_v46  ;;  %v3744_v46 = vld [vmem:[%s7007_s1 + $0x5f8] sm:$0xf0]  ;;  %v3475_v0 = vor.u32 %v4529_v49, %v3472_v53  ;;  %v4513_v38 = vld [vmem:[%s7007_s1 + $0x34c] sm:$0xf] }
  0x98   :  { %1535 = vmatpush.bf16.msrb.mxu2 %v3059_v45  ;;  %v4597_v45 = vld [vmem:[%s7007_s1 + $0x5ec] sm:$0xf]  ;;  %v3411_v49 = vor.u32 %v4513_v38, %v3408_v40  ;;  %v3850_v38 = vld [vmem:[%s7010_s3 + $0xa0] sm:$0xf] }
  0x99   :  { %1550 = vmatpush.bf16.msrb.mxu0 %v3171_v2  ;;  %v3747_v58 = vor.u32 %v4597_v45, %v3744_v46  ;;  %v4525_v2 = vld [vmem:[%s7007_s1 + $0x3ac] sm:$0xf]  ;;  %v3264_v46 = vld [vmem:[%s7007_s1 + $0x238] sm:$0xf0] }
  0x9a   :  { %1495 = vmatpush.bf16.msra.mxu1 %v3535_v1  ;;  %v3603_v1 = vor.u32 %v4561_v56, %v3600_v57  ;;  %v3459_v13 = vor.u32 %v4525_v2, %v3456_v4  ;;  %v4477_v45 = vld [vmem:[%s7007_s1 + $0x22c] sm:$0xf]  ;;  %v3392_v57 = vld [vmem:[%s7007_s1 + $0x338] sm:$0xf0] }
  0x9b   :  { %1508 = vmatpush.bf16.msrb.mxu3 %v3679_v62  ;;  %v4593_v62 = vld [vmem:[%s7007_s1 + $0x5cc] sm:$0xf]  ;;  %v3267_v56 = vor.u32 %v4477_v45, %v3264_v46  ;;  %v3648_v2 = vld [vmem:[%s7007_s1 + $0x538] sm:$0xf0] }
  0x9c   :  { %1536 = vmatpush.bf16.msrb.mxu2 %v3043_v61  ;;  %v3328_v61 = vld [vmem:[%s7007_s1 + $0x2b8] sm:$0xf0]  ;;  %v3731_v7 = vor.u32 %v4593_v62, %v3728_v63  ;;  %v4473_v63 = vld [vmem:[%s7007_s1 + $0x20c] sm:$0xf] }
  0x9d   :  { %1551 = vmatpush.bf16.msrb.mxu0 %v3155_v15  ;;  %v3331_v3 = vor.u32 %v4493_v59, %v3328_v61  ;;  %v4521_v15 = vld [vmem:[%s7007_s1 + $0x38c] sm:$0xf]  ;;  %v3520_v59 = vld [vmem:[%s7007_s1 + $0x438] sm:$0xf0] }
  0x9e   :  { %1496 = vmatpush.bf16.msra.mxu1 %v3519_v14  ;;  %v3587_v14 = vor.u32 %v4557_v5, %v3584_v6  ;;  %v3760_v4 = vld [vmem:[%s7007_s1 + $0x618] sm:$0xf0]  ;;  %v4569_v17 = vld [vmem:[%s7007_s1 + $0x50c] sm:$0xf] }
  0x9f   :  { %1509 = vmatpush.bf16.msrb.mxu3 %v3663_v11  ;;  %v4589_v11 = vld [vmem:[%s7007_s1 + $0x5ac] sm:$0xf] }
  0xa0   :  { %1537 = vmatpush.bf16.msrb.mxu2 %v3027_v10  ;;  %v3312_v10 = vld [vmem:[%s7007_s1 + $0x298] sm:$0xf0]  ;;  %v3715_v19 = vor.u32 %v4589_v11, %v3712_v12 }
  0xa1   :  { %1552 = vmatpush.bf16.msrb.mxu0 %v3139_v30  ;;  %v3315_v16 = vor.u32 %v4489_v9, %v3312_v10  ;;  %v6058_v9 = vld [vmem:[%s7009_s2] sm:$0xf]  ;;  %v3376_v12 = vld [vmem:[%s7007_s1 + $0x318] sm:$0xf0] }
  0xa2   :  { %1497 = vmatpush.bf16.msra.mxu1 %v3503_v29  ;;  %v3552_v29 = vld [vmem:[%s7007_s1 + $0x478] sm:$0xf0] }
  0xa3   :  { %1510 = vmatpush.bf16.msrb.mxu3 %v3647_v25  ;;  %v4517_v25 = vld [vmem:[%s7007_s1 + $0x36c] sm:$0xf]  ;;  %v3555_v36 = vor.u32 %v4549_v28, %v3552_v29  ;;  %v4011_v28 = vor.u32 %v4666_v21, %v4010_v20 }
  0xa4   :  { %1538 = vmatpush.bf16.msrb.mxu2 %v3011_v22  ;;  %v4585_v22 = vld [vmem:[%s7007_s1 + $0x58c] sm:$0xf]  ;;  %v3427_v35 = vor.u32 %v4517_v25, %v3424_v27  ;;  %v1247_v53 = vpop.f32.mrf.mxu0  ;;  %v4630_v27 = vld [vmem:[%s7010_s3 + $0xcc] sm:$0xf0] }
  0xa5   :  { %1498 = vmatmul.bf16.vlgmr.msra.gmra.mxu1 %v5285_v37  ;;  %1553 = vmatpush.bf16.msrb.mxu0 %v3123_v52  ;;  %v3699_v30 = vor.u32 %v4585_v22, %v3696_v23  ;;  %v4509_v52 = vld [vmem:[%s7007_s1 + $0x32c] sm:$0xf] }
  0xa6   :  { %1560 = vmatpush.bf16.msrb.mxu1 %v3363_v34  ;;  %v3680_v34 = vld [vmem:[%s7007_s1 + $0x578] sm:$0xf0]  ;;  %v3395_v5 = vor.u32 %v4509_v52, %v3392_v57  ;;  %v3818_v57 = vld [vmem:[%s7010_s3 + $0x60] sm:$0xf] }
  0xa7   :  { %1511 = vmatpush.bf16.msrb.mxu3 %v3631_v44  ;;  %v3683_v44 = vor.u32 %v4581_v33, %v3680_v34 }
  0xa8   :  { %1539 = vmatpush.bf16.msrb.mxu2 %v2995_v39  ;;  %1554 = vmatmul.bf16.vlgmr.msrb.gmra.mxu0 %v5097_v8  ;;  %v3283_v39 = vor.u32 %v4481_v31, %v3280_v32  ;;  %v6032_v61 = vpop.f32.mrf.mxu1  ;;  %v4662_v31 = vld [vmem:[%s7010_s3 + $0x1cc] sm:$0xf0] }
  0xa9   :  { %1602 = vmatpush.bf16.msra.mxu0 %v3747_v58  ;;  %v4541_v58 = vld [vmem:[%s7007_s1 + $0x42c] sm:$0xf]  ;;  %v6060_v10 = vpop.f32.mrf.mxu2 }
  0xaa   :  { %1561 = vmatpush.bf16.msrb.mxu1 %v3347_v51  ;;  %1512 = vmatmul.bf16.vlgmr.msrb.gmra.mxu3 %v5296_v42  ;;  %v3539_v51 = vor.u32 %v4545_v41, %v3536_v43  ;;  %v3523_v6 = vor.u32 %v4541_v58, %v3520_v59  ;;  %v4658_v43 = vld [vmem:[%s7010_s3 + $0x1ac] sm:$0xf0] }
  0xab   :  { %1574 = vmatpush.bf16.msra.mxu3 %v3491_v47  ;;  %1540 = vmatmul.bf16.vlgmr.msrb.gmra.mxu2 %v5061_v55  ;;  %v3440_v55 = vld [vmem:[%s7007_s1 + $0x398] sm:$0xf0]  ;;  %v4577_v47 = vld [vmem:[%s7007_s1 + $0x54c] sm:$0xf]  ;;  %v1289_v33 = vpop.f32.mrf.mxu3  ;;  %v4618_v58 = vld [vmem:[%s7010_s3 + $0x6c] sm:$0xf0] }
  0xac   :  { %1588 = vmatpush.bf16.msra.mxu2 %v3619_v48  ;;  %v3443_v8 = vor.u32 %v4521_v15, %v3440_v55  ;;  %v3664_v48 = vld [vmem:[%s7007_s1 + $0x558] sm:$0xf0]  ;;  %v4634_v55 = vld [vmem:[%s7010_s3 + $0xec] sm:$0xf0]  ;;  %v1249_v29 = vpop.f32.mrf.mxu0 }
  0xad   :  { %1603 = vmatpush.bf16.msra.mxu0 %v3731_v7  ;;  %v3667_v62 = vor.u32 %v4577_v47, %v3664_v48  ;;  %v4505_v7 = vld [vmem:[%s7007_s1 + $0x30c] sm:$0xf]  ;;  %v4622_v47 = vld [vmem:[%s7010_s3 + $0x8c] sm:$0xf0] }
  0xae   :  { %1562 = vmatpush.bf16.msrb.mxu1 %v3331_v3  ;;  %v4601_v3 = vld [vmem:[%s7007_s1 + $0x60c] sm:$0xf]  ;;  %v3379_v22 = vor.u32 %v4505_v7, %v3376_v12 }
  0xaf   :  { %1575 = vmatpush.bf16.msra.mxu3 %v3475_v0  ;;  %v3248_v0 = vld [vmem:[%s7007_s1 + $0x218] sm:$0xf0]  ;;  %v3763_v18 = vor.u32 %v4601_v3, %v3760_v4  ;;  %v3802_v4 = vld [vmem:[%s7010_s3 + $0x40] sm:$0xf] }
  0xb0   :  { %1589 = vmatpush.bf16.msra.mxu2 %v3603_v1  ;;  %v4573_v1 = vld [vmem:[%s7007_s1 + $0x52c] sm:$0xf]  ;;  %v3251_v11 = vor.u32 %v4473_v63, %v3248_v0  ;;  %v1263_v32 = vpop.f32.mrf.mxu1  ;;  %v3946_v63 = vld [vmem:[%s7010_s3 + $0x160] sm:$0xf]  ;;  %v4650_v0 = vld [vmem:[%s7010_s3 + $0x16c] sm:$0xf0] }
  0xb1   :  { %1604 = vmatpush.bf16.msra.mxu0 %v3715_v19  ;;  %v3651_v15 = vor.u32 %v4573_v1, %v3648_v2  ;;  %v3632_v19 = vld [vmem:[%s7007_s1 + $0x518] sm:$0xf0]  ;;  %v1277_v41 = vpop.f32.mrf.mxu2  ;;  %v3819_v1 = vor.u32 %v4618_v58, %v3818_v57  ;;  %v4694_v57 = vld [vmem:[%s7010_s3 + $0x2cc] sm:$0xf0]  ;;  %v4620_v58 = vld [vmem:[%s7010_s3 + $0x84] sm:$0xf] }
  0xb2   :  { %1563 = vmatpush.bf16.msrb.mxu1 %v3315_v16  ;;  %v3882_v16 = vld [vmem:[%s7010_s3 + $0xe0] sm:$0xf]  ;;  %v3635_v25 = vor.u32 %v4569_v17, %v3632_v19  ;;  %v4610_v17 = vld [vmem:[%s7010_s3 + $0x2c] sm:$0xf0] }
  0xb3   :  { %1576 = vmatpush.bf16.msra.mxu3 %v3459_v13  ;;  %v4537_v13 = vld [vmem:[%s7007_s1 + $0x40c] sm:$0xf]  ;;  %v3914_v19 = vld [vmem:[%s7010_s3 + $0x120] sm:$0xf] }
  0xb4   :  { %1590 = vmatpush.bf16.msra.mxu2 %v3587_v14  ;;  %v3504_v14 = vld [vmem:[%s7007_s1 + $0x418] sm:$0xf0] }
  0xb5   :  { %1605 = vmatpush.bf16.msra.mxu0 %v3699_v30  ;;  %v3507_v23 = vor.u32 %v4537_v13, %v3504_v14  ;;  %v3994_v30 = vld [vmem:[%s7010_s3 + $0x1c0] sm:$0xf] }
  0xb6   :  { %1564 = vmatpush.bf16.msrb.mxu1 %v3299_v26  ;;  %v3866_v26 = vld [vmem:[%s7010_s3 + $0xc0] sm:$0xf]  ;;  %v3995_v40 = vor.u32 %v4662_v31, %v3994_v30  ;;  %v4664_v31 = vld [vmem:[%s7010_s3 + $0x1e4] sm:$0xf] }
  0xb7   :  { %1577 = vmatpush.bf16.msra.mxu3 %v3443_v8  ;;  %v3883_v8 = vor.u32 %v4634_v55, %v3882_v16  ;;  %v3867_v34 = vor.u32 %v4630_v27, %v3866_v26  ;;  %v3786_v55 = vld [vmem:[%s7010_s3 + $0x20] sm:$0xf]  ;;  %v3884_v27 = vld [vmem:[%s7010_s3 + $0xf0] sm:$0xf0] }
  0xb8   :  { %1591 = vmatpush.bf16.msra.mxu2 %v3571_v24  ;;  %v246_v24 = vperm.slane %v6058_v9, 0 }
  0xb9   :  { %1606 = vmatpush.bf16.msra.mxu0 %v3683_v44 }
  0xba   :  { %1565 = vmatpush.bf16.msrb.mxu1 %v3283_v39  ;;  %v4626_v39 = vld [vmem:[%s7010_s3 + $0xac] sm:$0xf0] }
  0xbb   :  { %1578 = vmatpush.bf16.msra.mxu3 %v3427_v35  ;;  %v1248_v35 = vadd.f32 %v1247_v53, %v246_v24  ;;  %v3851_v44 = vor.u32 %v4626_v39, %v3850_v38  ;;  %v4628_v39 = vld [vmem:[%s7010_s3 + $0xc4] sm:$0xf] }
  0xbc   :  { %1592 = vmatpush.bf16.msra.mxu2 %v3555_v36  ;;  %v1250_v36 = vadd.f32 %v1249_v29, %v246_v24  ;;  %v4606_v24 = vld [vmem:[%s7010_s3 + $0xc] sm:$0xf0] }
  0xbd   :  { %1607 = vmatpush.bf16.msra.mxu0 %v3667_v62  ;;  %v1262_v45 = vadd.f32 %v6032_v61, %v1248_v35  ;;  %v1291_v61 = vpop.f32.mrf.mxu3  ;;  %v1331_v62 = vpop.f32.mrf.mxu2  ;;  %v4638_v29 = vld [vmem:[%s7010_s3 + $0x10c] sm:$0xf0] }
  0xbe   :  { %1566 = vmatpush.bf16.msrb.mxu1 %v3267_v56  ;;  %v1264_v46 = vadd.f32 %v1263_v32, %v1250_v36  ;;  %v4012_v32 = vld [vmem:[%s7010_s3 + $0x1f0] sm:$0xf0] }
  0xbf   :  { %1579 = vmatpush.bf16.msra.mxu3 %v3411_v49  ;;  %v1276_v53 = vadd.f32 %v6060_v10, %v1262_v45  ;;  %v3930_v10 = vld [vmem:[%s7010_s3 + $0x140] sm:$0xf] }
  0xc0   :  { %1593 = vmatpush.bf16.msra.mxu2 %v3539_v51  ;;  %v1278_v56 = vadd.f32 %v1277_v41, %v1264_v46  ;;  %v4015_v41 = vor.u32 %v4664_v31, %v4012_v32  ;;  %v4640_v32 = vld [vmem:[%s7010_s3 + $0x124] sm:$0xf] }
  0xc1   :  { %1608 = vmatpush.bf16.msra.mxu0 %v3651_v15  ;;  %v1303_v49 = vpop.f32.mrf.mxu0  ;;  %v1290_v2 = vadd.f32 %v1289_v33, %v1276_v53 }
  0xc2   :  { %1567 = vmatpush.bf16.msrb.mxu1 %v3251_v11  ;;  %v1317_v51 = vpop.f32.mrf.mxu1  ;;  %v1292_v3 = vadd.f32 %v1291_v61, %v1278_v56  ;;  %v4646_v11 = vld [vmem:[%s7010_s3 + $0x14c] sm:$0xf0]  ;;  %v4122_v56 = vld [vmem:[%s7010_s3 + $0x2c0] sm:$0xf] }
  0xc3   :  { %1580 = vmatpush.bf16.msra.mxu3 %v3395_v5  ;;  %v4614_v5 = vld [vmem:[%s7010_s3 + $0x4c] sm:$0xf0]  ;;  %v1304_v12 = vadd.f32 %v1303_v49, %v1290_v2  ;;  %v3852_v49 = vld [vmem:[%s7010_s3 + $0xb0] sm:$0xf0] }
  0xc4   :  { %1594 = vmatpush.bf16.msra.mxu2 %v3523_v6  ;;  %v3947_v6 = vor.u32 %v4650_v0, %v3946_v63  ;;  %v3803_v15 = vor.u32 %v4614_v5, %v3802_v4  ;;  %v3964_v2 = vld [vmem:[%s7010_s3 + $0x190] sm:$0xf0]  ;;  %v4106_v4 = vld [vmem:[%s7010_s3 + $0x2a0] sm:$0xf]  ;;  %v4690_v5 = vld [vmem:[%s7010_s3 + $0x2ac] sm:$0xf0] }
  0xc5   :  { %1568 = vmatmul.bf16.vlgmr.msrb.gmra.mxu1 %v5059_v54  ;;  %1609 = vmatpush.bf16.msra.mxu0 %v3635_v25  ;;  %v3978_v54 = vld [vmem:[%s7010_s3 + $0x1a0] sm:$0xf]  ;;  %v1318_v20 = vadd.f32 %v1317_v51, %v1304_v12  ;;  %v1333_v21 = vpop.f32.mrf.mxu2  ;;  %v4632_v25 = vld [vmem:[%s7010_s3 + $0xe4] sm:$0xf] }
  0xc6   :  { %1623 = vmatpush.bf16.msra.mxu1 %v3763_v18  ;;  %v3979_v48 = vor.u32 %v4658_v43, %v3978_v54  ;;  %v3931_v18 = vor.u32 %v4646_v11, %v3930_v10  ;;  %v3887_v36 = vor.u32 %v4632_v25, %v3884_v27  ;;  %v4660_v43 = vld [vmem:[%s7010_s3 + $0x1c4] sm:$0xf]  ;;  %v4107_v11 = vor.u32 %v4690_v5, %v4106_v4  ;;  %v4074_v25 = vld [vmem:[%s7010_s3 + $0x260] sm:$0xf] }
  0xc7   :  { %1581 = vmatpush.bf16.msra.mxu3 %v3379_v22  ;;  %v3787_v22 = vor.u32 %v4610_v17, %v3786_v55  ;;  %v1332_v30 = vadd.f32 %v1331_v62, %v1318_v20  ;;  %v4656_v51 = vld [vmem:[%s7010_s3 + $0x1a4] sm:$0xf]  ;;  %v4123_v62 = vor.u32 %v4694_v57, %v4122_v56  ;;  %v3804_v55 = vld [vmem:[%s7010_s3 + $0x50] sm:$0xf0]  ;;  %v4674_v56 = vld [vmem:[%s7010_s3 + $0x22c] sm:$0xf0] }
  0xc8   :  { %1595 = vmatpush.bf16.msra.mxu2 %v3507_v23  ;;  %1610 = vmatmul.bf16.vlgmr.msra.gmra.mxu0 %v5296_v42  ;;  %v4654_v42 = vld [vmem:[%s7010_s3 + $0x18c] sm:$0xf0]  ;;  %v4648_v12 = vld [vmem:[%s7010_s3 + $0x164] sm:$0xf] }
  0xc9   :  { %v1305_v7 = vpop.f32.mrf.mxu0  ;;  %v6194_v35 = vpop.f32.mrf.mxu3  ;;  %v1630_v54 = vmax.f32 %v1332_v30, 0.0  ;;  %v4644_v20 = vld [vmem:[%s7010_s3 + $0x144] sm:$0xf] }
  0xca   :  { %2434 = vmatpush.bf16.msrb.mxu1 %v4011_v28  ;;  %1582 = vmatmul.bf16.vlgmr.msra.gmra.mxu3 %v5072_v60  ;;  %v3834_v60 = vld [vmem:[%s7010_s3 + $0x80] sm:$0xf]  ;;  %v1306_v13 = vadd.f32 %v1305_v7, %v1292_v3  ;;  %v1319_v14 = vpop.f32.mrf.mxu1  ;;  %v3820_v7 = vld [vmem:[%s7010_s3 + $0x70] sm:$0xf0]  ;;  %v4608_v27 = vld [vmem:[%s7010_s3 + $0x24] sm:$0xf] }
  0xcb   :  { %2420 = vmatpush.bf16.msrb.mxu3 %v3883_v8  ;;  %1596 = vmatmul.bf16.vlgmr.msra.gmra.mxu2 %v5285_v37  ;;  %v3962_v37 = vld [vmem:[%s7010_s3 + $0x180] sm:$0xf]  ;;  %v3835_v52 = vor.u32 %v4622_v47, %v3834_v60  ;;  %v4698_v47 = vld [vmem:[%s7010_s3 + $0x2ec] sm:$0xf0] }
  0xcc   :  { %v3963_v59 = vor.u32 %v4654_v42, %v3962_v37  ;;  %v1320_v16 = vadd.f32 %v1319_v14, %v1306_v13  ;;  %v3770_v8 = vld [vmem:[%s7010_s3] sm:$0xf]  ;;  %v3948_v13 = vld [vmem:[%s7010_s3 + $0x170] sm:$0xf0] }
  0xcd   :  { %v3898_v28 = vld [vmem:[%s7010_s3 + $0x100] sm:$0xf]  ;;  %v3771_v33 = vor.u32 %v4606_v24, %v3770_v8  ;;  %v3951_v17 = vor.u32 %v4648_v12, %v3948_v13  ;;  %v3858_v12 = vld [vmem:[%s7010_s3 + $0xa8] sm:$0xf]  ;;  %v4627_v13 = vld [vmem:[%s7010_s3 + $0xb4] sm:$0xf0] }
  0xce   :  { %2435 = vmatpush.bf16.msrb.mxu1 %v3995_v40  ;;  %v1334_v23 = vadd.f32 %v1333_v21, %v1320_v16  ;;  %v3899_v38 = vor.u32 %v4638_v29, %v3898_v28  ;;  %v3868_v40 = vld [vmem:[%s7010_s3 + $0xd0] sm:$0xf0]  ;;  %v4138_v60 = vld [vmem:[%s7010_s3 + $0x2e0] sm:$0xf]  ;;  %v1359_v63 = vpop.f32.mrf.mxu2  ;;  %v4612_v16 = vld [vmem:[%s7010_s3 + $0x44] sm:$0xf] }
  0xcf   :  { %2421 = vmatpush.bf16.msrb.mxu3 %v3867_v34  ;;  %v3871_v46 = vor.u32 %v4628_v39, %v3868_v40  ;;  %v4139_v42 = vor.u32 %v4698_v47, %v4138_v60  ;;  %v3932_v21 = vld [vmem:[%s7010_s3 + $0x150] sm:$0xf0]  ;;  %v3807_v24 = vor.u32 %v4612_v16, %v3804_v55  ;;  %v4058_v39 = vld [vmem:[%s7010_s3 + $0x240] sm:$0xf]  ;;  %v4678_v40 = vld [vmem:[%s7010_s3 + $0x24c] sm:$0xf0] }
  0xd0   :  { %v1634_v34 = vmax.f32 %v1334_v23, 0.0  ;;  %v247_v23 = vperm.slane %v6058_v9, 1  ;;  %v3788_v28 = vld [vmem:[%s7010_s3 + $0x30] sm:$0xf0]  ;;  %v3935_v29 = vor.u32 %v4644_v20, %v3932_v21  ;;  %v4635_v60 = vld [vmem:[%s7010_s3 + $0xf4] sm:$0xf0] }
  0xd1   :  { %2448 = vmatpush.bf16.msrb.mxu2 %v4139_v42  ;;  %v1347_v0 = vpop.f32.mrf.mxu3  ;;  %v4636_v47 = vld [vmem:[%s7010_s3 + $0x104] sm:$0xf]  ;;  %v4623_v21 = vld [vmem:[%s7010_s3 + $0x94] sm:$0xf0] }
  0xd2   :  { %2436 = vmatpush.bf16.msrb.mxu1 %v3979_v48  ;;  %v6208_v45 = vpack.c.bf16 %v1634_v34, %v1630_v54  ;;  %v4624_v48 = vld [vmem:[%s7010_s3 + $0xa4] sm:$0xf]  ;;  %v1346_v34 = vadd.f32 %v6194_v35, %v247_v23  ;;  %v3772_v35 = vld [vmem:[%s7010_s3 + $0x10] sm:$0xf0]  ;;  %v3890_v54 = vld [vmem:[%s7010_s3 + $0xe8] sm:$0xf] }
  0xd3   :  { %2422 = vmatpush.bf16.msrb.mxu3 %v3851_v44  ;;  %v3996_v44 = vld [vmem:[%s7010_s3 + $0x1d0] sm:$0xf0]  ;;  %v3855_v53 = vor.u32 %v4624_v48, %v3852_v49 }
  0xd4   :  { %v3999_v37 = vor.u32 %v4660_v43, %v3996_v44  ;;  %v4059_v44 = vor.u32 %v4678_v40, %v4058_v39  ;;  %v3900_v48 = vld [vmem:[%s7010_s3 + $0x110] sm:$0xf0]  ;;  %v1360_v49 = vadd.f32 %v1359_v63, %v1346_v34  ;;  %v4631_v63 = vld [vmem:[%s7010_s3 + $0xd4] sm:$0xf0]  ;;  %v4018_v40 = vld [vmem:[%s7010_s3 + $0x1e8] sm:$0xf] }
  0xd5   :  { %3767 = vmatmul.msk.bf16.vlgmr.msra.gmra.mxu1 %vm1234_vm0, %v5188_v50  ;;  %v4642_v50 = vld [vmem:[%s7010_s3 + $0x12c] sm:$0xf0]  ;;  %2449 = vmatpush.bf16.msrb.mxu2 %v4123_v62  ;;  %v3874_v62 = vld [vmem:[%s7010_s3 + $0xc8] sm:$0xf] }
  0xd6   :  { %2437 = vmatpush.bf16.msrb.mxu1 %v3963_v59  ;;  %v3915_v26 = vor.u32 %v4642_v50, %v3914_v19  ;;  %v3836_v59 = vld [vmem:[%s7010_s3 + $0x90] sm:$0xf0]  ;;  %v1361_v8 = vpop.f32.mrf.mxu2  ;;  %v3875_v5 = vor.u32 %v4631_v63, %v3874_v62 }
  0xd7   :  { %2423 = vmatpush.bf16.msrb.mxu3 %v3835_v52  ;;  %v3980_v52 = vld [vmem:[%s7010_s3 + $0x1b0] sm:$0xf0]  ;;  %v3839_v3 = vor.u32 %v4620_v58, %v3836_v59  ;;  %v3891_v58 = vor.u32 %v4635_v60, %v3890_v54  ;;  %v3903_v59 = vor.u32 %v4636_v47, %v3900_v48  ;;  %v3810_v54 = vld [vmem:[%s7010_s3 + $0x48] sm:$0xf]  ;;  %v4615_v60 = vld [vmem:[%s7010_s3 + $0x54] sm:$0xf0] }
  0xd8   :  { %v3983_v61 = vor.u32 %v4656_v51, %v3980_v52  ;;  %v4684_v47 = vld [vmem:[%s7010_s3 + $0x284] sm:$0xf]  ;;  %v4076_v62 = vld [vmem:[%s7010_s3 + $0x270] sm:$0xf0] }
  0xd9   :  { %2450 = vmatpush.bf16.msrb.mxu2 %v4107_v11 }
  0xda   :  { %2438 = vmatpush.bf16.msrb.mxu1 %v3947_v6  ;;  %v4616_v6 = vld [vmem:[%s7010_s3 + $0x64] sm:$0xf] }
  0xdb   :  { %2424 = vmatpush.bf16.msrb.mxu3 %v3819_v1  ;;  %v4652_v1 = vld [vmem:[%s7010_s3 + $0x184] sm:$0xf]  ;;  %v3823_v14 = vor.u32 %v4616_v6, %v3820_v7 }
  0xdc   :  { %v3967_v10 = vor.u32 %v4652_v1, %v3964_v2  ;;  %v4026_v2 = vld [vmem:[%s7010_s3 + $0x200] sm:$0xf]  ;;  %v4696_v7 = vld [vmem:[%s7010_s3 + $0x2e4] sm:$0xf] }
  0xde   :  { %2439 = vmatpush.bf16.msrb.mxu1 %v3931_v18  ;;  %v4686_v18 = vld [vmem:[%s7010_s3 + $0x28c] sm:$0xf0] }
  0xdf   :  { %2425 = vmatpush.bf16.msrb.mxu3 %v3803_v15  ;;  %v4090_v15 = vld [vmem:[%s7010_s3 + $0x280] sm:$0xf] }
  0xe1   :  { %v1373_v19 = vpop.f32.mrf.mxu0 }
  0xe2   :  { %2440 = vmatpush.bf16.msrb.mxu1 %v3915_v26  ;;  %v4682_v26 = vld [vmem:[%s7010_s3 + $0x26c] sm:$0xf0]  ;;  %v1387_v31 = vpop.f32.mrf.mxu1  ;;  %v1374_v57 = vadd.f32 %v1373_v19, %v1360_v49  ;;  %v4692_v19 = vld [vmem:[%s7010_s3 + $0x2c4] sm:$0xf]  ;;  %v4092_v49 = vld [vmem:[%s7010_s3 + $0x290] sm:$0xf0] }
  0xe3   :  { %2426 = vmatpush.bf16.msrb.mxu3 %v3787_v22  ;;  %v4091_v22 = vor.u32 %v4686_v18, %v4090_v15  ;;  %v4075_v30 = vor.u32 %v4682_v26, %v4074_v25  ;;  %v3842_v18 = vld [vmem:[%s7010_s3 + $0x88] sm:$0xf] }
  0xe4   :  { %v1388_v4 = vadd.f32 %v1387_v31, %v1374_v57  ;;  %v4108_v31 = vld [vmem:[%s7010_s3 + $0x2b0] sm:$0xf0] }
  0xe5   :  { %2451 = vmatpush.bf16.msrb.mxu2 %v4091_v22 }
  0xe6   :  { %2441 = vmatpush.bf16.msrb.mxu1 %v3899_v38  ;;  %v3791_v38 = vor.u32 %v4608_v27, %v3788_v28  ;;  %v3843_v28 = vor.u32 %v4623_v21, %v3842_v18  ;;  %v4714_v18 = vld [vmem:[%s7010_s3 + $0x36c] sm:$0xf0]  ;;  %v3892_v21 = vld [vmem:[%s7010_s3 + $0xf8] sm:$0xf0] }
  0xe7   :  { %2427 = vmatpush.bf16.msrb.mxu3 %v3771_v33  ;;  %v3916_v33 = vld [vmem:[%s7010_s3 + $0x130] sm:$0xf0] }
  0xe8   :  { %v3919_v43 = vor.u32 %v4640_v32, %v3916_v33  ;;  %v4619_v33 = vld [vmem:[%s7010_s3 + $0x74] sm:$0xf0] }
  0xe9   :  { %v6277_v50 = vpop.f32.mrf.mxu3  ;;  %2452 = vmatpush.bf16.msrb.mxu2 %v4075_v30  ;;  %v1375_v42 = vpop.f32.mrf.mxu0  ;;  %v4688_v30 = vld [vmem:[%s7010_s3 + $0x2a4] sm:$0xf] }
  0xea   :  { %2490 = vmatpush.bf16.msra.mxu1 %v4015_v41  ;;  %2428 = vmatmul.bf16.vlgmr.msrb.gmra.mxu3 %v6208_v45  ;;  %v4604_v41 = vld [vmem:[%s7010_s3 + $0x4] sm:$0xf]  ;;  %v1389_v1 = vpop.f32.mrf.mxu1  ;;  %v1402_v15 = vadd.f32 %v6277_v50, %v1388_v4  ;;  %v4124_v50 = vld [vmem:[%s7010_s3 + $0x2d0] sm:$0xf0]  ;;  %v4111_v34 = vor.u32 %v4688_v30, %v4108_v31  ;;  %v3986_v4 = vld [vmem:[%s7010_s3 + $0x1a8] sm:$0xf] }
  0xeb   :  { %2476 = vmatpush.bf16.msra.mxu3 %v3887_v36  ;;  %v1348_v36 = vadd.f32 %v1347_v0, %v247_v23  ;;  %v3775_v52 = vor.u32 %v4604_v41, %v3772_v35  ;;  %v4127_v22 = vor.u32 %v4692_v19, %v4124_v50  ;;  %v4266_v23 = vld [vmem:[%s7010_s3 + $0x3e0] sm:$0xf]  ;;  %v4667_v41 = vld [vmem:[%s7010_s3 + $0x1f4] sm:$0xf0]  ;;  %v4629_v31 = vld [vmem:[%s7010_s3 + $0xcc] sm:$0xf] }
  0xec   :  { %v4019_v48 = vor.u32 %v4667_v41, %v4018_v40  ;;  %v4655_v50 = vld [vmem:[%s7010_s3 + $0x194] sm:$0xf0] }
  0xed   :  { %2453 = vmatpush.bf16.msrb.mxu2 %v4059_v44  ;;  %v4651_v30 = vld [vmem:[%s7010_s3 + $0x174] sm:$0xf0] }
  0xee   :  { %2491 = vmatpush.bf16.msra.mxu1 %v3999_v37  ;;  %v1362_v37 = vadd.f32 %v1361_v8, %v1348_v36  ;;  %v1415_v51 = vpop.f32.mrf.mxu2  ;;  %v4730_v8 = vld [vmem:[%s7010_s3 + $0x3ec] sm:$0xf0]  ;;  %v4250_v36 = vld [vmem:[%s7010_s3 + $0x3c0] sm:$0xf] }
  0xef   :  { %2477 = vmatpush.bf16.msra.mxu3 %v3871_v46  ;;  %v4267_v25 = vor.u32 %v4730_v8, %v4266_v23  ;;  %v4672_v8 = vld [vmem:[%s7010_s3 + $0x224] sm:$0xf] }
  0xf0   :  { %v1376_v0 = vadd.f32 %v1375_v42, %v1362_v37  ;;  %v4234_v37 = vld [vmem:[%s7010_s3 + $0x3a0] sm:$0xf]  ;;  %v4722_v42 = vld [vmem:[%s7010_s3 + $0x3ac] sm:$0xf0] }
  0xf1   :  { %v1403_v46 = vpop.f32.mrf.mxu3  ;;  %2462 = vmatpush.bf16.msrb.mxu0 %v4267_v25  ;;  %v4235_v57 = vor.u32 %v4722_v42, %v4234_v37  ;;  %v248_v37 = vperm.slane %v6058_v9, 2 }
  0xf2   :  { %2492 = vmatpush.bf16.msra.mxu1 %v3983_v61  ;;  %v1390_v16 = vadd.f32 %v1389_v1, %v1376_v0  ;;  %v4611_v0 = vld [vmem:[%s7010_s3 + $0x34] sm:$0xf0] }
  0xf3   :  { %2478 = vmatpush.bf16.msra.mxu3 %v3855_v53  ;;  %v4042_v53 = vld [vmem:[%s7010_s3 + $0x220] sm:$0xf] }
  0xf4   :  { %v4043_v61 = vor.u32 %v4674_v56, %v4042_v53  ;;  %v1404_v55 = vadd.f32 %v1403_v46, %v1390_v16  ;;  %v4663_v53 = vld [vmem:[%s7010_s3 + $0x1d4] sm:$0xf0]  ;;  %v4095_v56 = vor.u32 %v4684_v47, %v4092_v49  ;;  %v3970_v16 = vld [vmem:[%s7010_s3 + $0x188] sm:$0xf]  ;;  %v3860_v47 = vld [vmem:[%s7010_s3 + $0xb8] sm:$0xf0] }
  0xf5   :  { %v3971_v25 = vor.u32 %v4655_v50, %v3970_v16  ;;  %v4724_v16 = vld [vmem:[%s7010_s3 + $0x3c4] sm:$0xf]  ;;  %v4020_v50 = vld [vmem:[%s7010_s3 + $0x1f8] sm:$0xf0] }
  0xf6   :  { %2493 = vmatpush.bf16.msra.mxu1 %v3967_v10  ;;  %2454 = vmatpush.bf16.msrb.mxu2 %v4043_v61  ;;  %v4140_v10 = vld [vmem:[%s7010_s3 + $0x2f0] sm:$0xf0]  ;;  %v1417_v20 = vpop.f32.mrf.mxu2  ;;  %v4680_v61 = vld [vmem:[%s7010_s3 + $0x264] sm:$0xf] }
  0xf7   :  { %2479 = vmatpush.bf16.msra.mxu3 %v3839_v3  ;;  %v4670_v3 = vld [vmem:[%s7010_s3 + $0x20c] sm:$0xf0]  ;;  %v1418_v26 = vadd.f32 %v1417_v20, %v1404_v55  ;;  %v4079_v1 = vor.u32 %v4680_v61, %v4076_v62  ;;  %v4633_v20 = vld [vmem:[%s7010_s3 + $0xec] sm:$0xf]  ;;  %v3844_v62 = vld [vmem:[%s7010_s3 + $0x98] sm:$0xf0] }
  0xf8   :  { %v4027_v6 = vor.u32 %v4670_v3, %v4026_v2  ;;  %v4218_v2 = vld [vmem:[%s7010_s3 + $0x380] sm:$0xf]  ;;  %v4718_v3 = vld [vmem:[%s7010_s3 + $0x38c] sm:$0xf0] }
  0xf9   :  { %v1429_v11 = vpop.f32.mrf.mxu3  ;;  %v4702_v61 = vld [vmem:[%s7010_s3 + $0x30c] sm:$0xf0] }
  0xfa   :  { %2494 = vmatpush.bf16.msra.mxu1 %v3951_v17  ;;  %2455 = vmatpush.bf16.msrb.mxu2 %v4027_v6  ;;  %v3859_v17 = vor.u32 %v4627_v13, %v3858_v12  ;;  %v4219_v6 = vor.u32 %v4718_v3, %v4218_v2  ;;  %v4607_v12 = vld [vmem:[%s7010_s3 + $0x14] sm:$0xf0]  ;;  %v4676_v13 = vld [vmem:[%s7010_s3 + $0x244] sm:$0xf] }
  0xfb   :  { %2480 = vmatpush.bf16.msra.mxu3 %v3823_v14  ;;  %v4143_v14 = vor.u32 %v4696_v7, %v4140_v10  ;;  %v3778_v10 = vld [vmem:[%s7010_s3 + $0x8] sm:$0xf] }
  0xfc   :  { %v3779_v23 = vor.u32 %v4607_v12, %v3778_v10  ;;  %v3906_v10 = vld [vmem:[%s7010_s3 + $0x108] sm:$0xf]  ;;  %v4617_v12 = vld [vmem:[%s7010_s3 + $0x6c] sm:$0xf] }
  0xfe   :  { %2495 = vmatpush.bf16.msra.mxu1 %v3935_v29  ;;  %2504 = vmatpush.bf16.msra.mxu2 %v4143_v14  ;;  %v3826_v29 = vld [vmem:[%s7010_s3 + $0x68] sm:$0xf]  ;;  %v4060_v14 = vld [vmem:[%s7010_s3 + $0x250] sm:$0xf0] }
  0xff   :  { %2481 = vmatpush.bf16.msra.mxu3 %v3807_v24  ;;  %v1416_v24 = vadd.f32 %v1415_v51, %v1402_v15  ;;  %v3827_v46 = vor.u32 %v4619_v33, %v3826_v29  ;;  %v4063_v55 = vor.u32 %v4676_v13, %v4060_v14  ;;  %v4710_v29 = vld [vmem:[%s7010_s3 + $0x34c] sm:$0xf0] }
 0x101   :  { %v1430_v27 = vadd.f32 %v1429_v11, %v1416_v24  ;;  %v1431_v32 = vpop.f32.mrf.mxu3  ;;  %v6454_v7 = vpop.f32.mrf.mxu0  ;;  %v4044_v24 = vld [vmem:[%s7010_s3 + $0x230] sm:$0xf0] }
 0x102   :  { %2496 = vmatpush.bf16.msra.mxu1 %v3919_v43  ;;  %2505 = vmatpush.bf16.msra.mxu2 %v4127_v22  ;;  %v1432_v39 = vadd.f32 %v1431_v32, %v1418_v26  ;;  %v1443_v19 = vpop.f32.mrf.mxu1  ;;  %v3895_v26 = vor.u32 %v4633_v20, %v3892_v21  ;;  %v3876_v32 = vld [vmem:[%s7010_s3 + $0xd8] sm:$0xf0]  ;;  %v4047_v33 = vor.u32 %v4672_v8, %v4044_v24  ;;  %v4613_v8 = vld [vmem:[%s7010_s3 + $0x4c] sm:$0xf] }
 0x103   :  { %2482 = vmatpush.bf16.msra.mxu3 %v3791_v38  ;;  %v4726_v38 = vld [vmem:[%s7010_s3 + $0x3cc] sm:$0xf0]  ;;  %v1631_v43 = vmax.f32 %v1430_v27, 0.0  ;;  %v3954_v27 = vld [vmem:[%s7010_s3 + $0x168] sm:$0xf]  ;;  %v1444_v2 = vadd.f32 %v1443_v19, %v248_v37 }
 0x104   :  { %v4251_v35 = vor.u32 %v4726_v38, %v4250_v36  ;;  %v1635_v44 = vmax.f32 %v1432_v39, 0.0  ;;  %v4668_v38 = vld [vmem:[%s7010_s3 + $0x204] sm:$0xf]  ;;  %v4028_v39 = vld [vmem:[%s7010_s3 + $0x210] sm:$0xf0]  ;;  %v3955_v41 = vor.u32 %v4651_v30, %v3954_v27 }
 0x105   :  { %v4665_v19 = vld [vmem:[%s7010_s3 + $0x1ec] sm:$0xf]  ;;  %v4236_v27 = vld [vmem:[%s7010_s3 + $0x3b0] sm:$0xf0] }
 0x106   :  { %2497 = vmatpush.bf16.msra.mxu1 %v3903_v59  ;;  %2506 = vmatpush.bf16.msra.mxu2 %v4111_v34  ;;  %v6421_v51 = vpack.c.bf16 %v1635_v44, %v1631_v43  ;;  %v3794_v59 = vld [vmem:[%s7010_s3 + $0x28] sm:$0xf]  ;;  %v4170_v43 = vld [vmem:[%s7010_s3 + $0x320] sm:$0xf]  ;;  %v4706_v44 = vld [vmem:[%s7010_s3 + $0x32c] sm:$0xf0]  ;;  %v4023_v24 = vor.u32 %v4665_v19, %v4020_v50 }
 0x107   :  { %2483 = vmatpush.bf16.msra.mxu3 %v3775_v52  ;;  %2463 = vmatpush.bf16.msrb.mxu0 %v4251_v35  ;;  %v4002_v52 = vld [vmem:[%s7010_s3 + $0x1c8] sm:$0xf]  ;;  %v3795_v11 = vor.u32 %v4611_v0, %v3794_v59  ;;  %v3879_v35 = vor.u32 %v4629_v31, %v3876_v32  ;;  %v4171_v49 = vor.u32 %v4706_v44, %v4170_v43  ;;  %v4154_v59 = vld [vmem:[%s7010_s3 + $0x300] sm:$0xf]  ;;  %v4728_v0 = vld [vmem:[%s7010_s3 + $0x3e4] sm:$0xf] }
 0x108   :  { %2442 = vmatmul.bf16.vlgmr.msrb.gmra.mxu1 %v6421_v51  ;;  %v4003_v63 = vor.u32 %v4663_v53, %v4002_v52  ;;  %v3922_v52 = vld [vmem:[%s7010_s3 + $0x128] sm:$0xf]  ;;  %v4643_v53 = vld [vmem:[%s7010_s3 + $0x134] sm:$0xf0]  ;;  %v4661_v30 = vld [vmem:[%s7010_s3 + $0x1cc] sm:$0xf] }
 0x109   :  { %v6516_v40 = vpop.f32.mrf.mxu0  ;;  %v4004_v31 = vld [vmem:[%s7010_s3 + $0x1d8] sm:$0xf0]  ;;  %v4657_v44 = vld [vmem:[%s7010_s3 + $0x1ac] sm:$0xf]  ;;  %v4172_v19 = vld [vmem:[%s7010_s3 + $0x330] sm:$0xf0] }
 0x10a   :  { %2484 = vmatmul.bf16.vlgmr.msra.gmra.mxu3 %v6208_v45  ;;  %2546 = vmatpush.bf16.msrb.mxu1 %v4019_v48  ;;  %v4031_v48 = vor.u32 %v4668_v38, %v4028_v39  ;;  %v1445_v42 = vpop.f32.mrf.mxu1  ;;  %v3796_v38 = vld [vmem:[%s7010_s3 + $0x38] sm:$0xf0]  ;;  %v4716_v39 = vld [vmem:[%s7010_s3 + $0x384] sm:$0xf] }
 0x10b   :  { %2532 = vmatpush.bf16.msrb.mxu3 %v3891_v58  ;;  %v3811_v58 = vor.u32 %v4615_v60, %v3810_v54  ;;  %2507 = vmatpush.bf16.msra.mxu2 %v4095_v56  ;;  %v3938_v54 = vld [vmem:[%s7010_s3 + $0x148] sm:$0xf]  ;;  %v4625_v60 = vld [vmem:[%s7010_s3 + $0xac] sm:$0xf] }
 0x10c   :  { %2464 = vmatpush.bf16.msrb.mxu0 %v4235_v57  ;;  %v3863_v57 = vor.u32 %v4625_v60, %v3860_v47 }
 0x10d   :  { %v1457_v36 = vpop.f32.mrf.mxu3 }
 0x10e   :  { %2547 = vmatpush.bf16.msrb.mxu1 %v4003_v63  ;;  %v4155_v63 = vor.u32 %v4702_v61, %v4154_v59  ;;  %v1485_v13 = vpop.f32.mrf.mxu2  ;;  %v4653_v59 = vld [vmem:[%s7010_s3 + $0x18c] sm:$0xf]  ;;  %v3972_v61 = vld [vmem:[%s7010_s3 + $0x198] sm:$0xf0] }
 0x10f   :  { %2533 = vmatpush.bf16.msrb.mxu3 %v3875_v5  ;;  %v4659_v5 = vld [vmem:[%s7010_s3 + $0x1b4] sm:$0xf0]  ;;  %2508 = vmatpush.bf16.msra.mxu2 %v4079_v1  ;;  %v4268_v1 = vld [vmem:[%s7010_s3 + $0x3f0] sm:$0xf0] }
 0x110   :  { %v3987_v15 = vor.u32 %v4659_v5, %v3986_v4  ;;  %2465 = vmatpush.bf16.msrb.mxu0 %v4219_v6  ;;  %v4271_v3 = vor.u32 %v4728_v0, %v4268_v1  ;;  %v3923_v5 = vor.u32 %v4643_v53, %v3922_v52  ;;  %v3780_v52 = vld [vmem:[%s7010_s3 + $0x18] sm:$0xf0]  ;;  %v4712_v53 = vld [vmem:[%s7010_s3 + $0x364] sm:$0xf] }
 0x111   :  { %v6563_v4 = vpop.f32.mrf.mxu0 }
 0x112   :  { %2548 = vmatpush.bf16.msrb.mxu1 %v3987_v15  ;;  %v3828_v15 = vld [vmem:[%s7010_s3 + $0x78] sm:$0xf0] }
 0x113   :  { %2534 = vmatpush.bf16.msrb.mxu3 %v3859_v17  ;;  %v4202_v17 = vld [vmem:[%s7010_s3 + $0x360] sm:$0xf]  ;;  %2509 = vmatpush.bf16.msra.mxu2 %v4063_v55  ;;  %v4252_v55 = vld [vmem:[%s7010_s3 + $0x3d0] sm:$0xf0] }
 0x114   :  { %v4203_v22 = vor.u32 %v4714_v18, %v4202_v17  ;;  %v1458_v17 = vadd.f32 %v1457_v36, %v1444_v2  ;;  %v1446_v18 = vadd.f32 %v1445_v42, %v248_v37  ;;  %v4255_v20 = vor.u32 %v4724_v16, %v4252_v55  ;;  %v4146_v16 = vld [vmem:[%s7010_s3 + $0x2e8] sm:$0xf] }
 0x115   :  { %v1459_v14 = vpop.f32.mrf.mxu3  ;;  %v4007_v36 = vor.u32 %v4661_v30, %v4004_v31  ;;  %v3975_v2 = vor.u32 %v4653_v59, %v3972_v61  ;;  %v4641_v30 = vld [vmem:[%s7010_s3 + $0x12c] sm:$0xf]  ;;  %v3924_v31 = vld [vmem:[%s7010_s3 + $0x138] sm:$0xf0]  ;;  %v4066_v61 = vld [vmem:[%s7010_s3 + $0x248] sm:$0xf] }
 0x116   :  { %2466 = vmatpush.bf16.msrb.mxu0 %v4203_v22  ;;  %2549 = vmatpush.bf16.msrb.mxu1 %v3971_v25  ;;  %v3812_v25 = vld [vmem:[%s7010_s3 + $0x58] sm:$0xf0]  ;;  %v1487_v47 = vpop.f32.mrf.mxu2 }
 0x117   :  { %2535 = vmatpush.bf16.msrb.mxu3 %v3843_v28  ;;  %v4186_v28 = vld [vmem:[%s7010_s3 + $0x340] sm:$0xf]  ;;  %2510 = vmatpush.bf16.msra.mxu2 %v4047_v33  ;;  %v3815_v33 = vor.u32 %v4613_v8, %v3812_v25  ;;  %v4130_v25 = vld [vmem:[%s7010_s3 + $0x2c8] sm:$0xf] }
 0x118   :  { %v4187_v34 = vor.u32 %v4710_v29, %v4186_v28  ;;  %2498 = vmatmul.bf16.vlgmr.msra.gmra.mxu1 %v6421_v51  ;;  %v1472_v28 = vadd.f32 %v6454_v7, %v1458_v17  ;;  %v1460_v29 = vadd.f32 %v1459_v14, %v1446_v18  ;;  %v4704_v18 = vld [vmem:[%s7010_s3 + $0x324] sm:$0xf] }
 0x119   :  { %v1529_v43 = vpop.f32.mrf.mxu0 }
 0x11a   :  { %2467 = vmatpush.bf16.msrb.mxu0 %v4187_v34  ;;  %2550 = vmatpush.bf16.msrb.mxu1 %v3955_v41  ;;  %v4609_v34 = vld [vmem:[%s7010_s3 + $0x2c] sm:$0xf]  ;;  %v4220_v41 = vld [vmem:[%s7010_s3 + $0x390] sm:$0xf0] }
 0x11b   :  { %2536 = vmatpush.bf16.msrb.mxu3 %v3827_v46  ;;  %v4647_v46 = vld [vmem:[%s7010_s3 + $0x154] sm:$0xf0]  ;;  %2511 = vmatpush.bf16.msra.mxu2 %v4031_v48  ;;  %v4223_v60 = vor.u32 %v4716_v39, %v4220_v41  ;;  %v4637_v41 = vld [vmem:[%s7010_s3 + $0x10c] sm:$0xf] }
 0x11c   :  { %v3939_v56 = vor.u32 %v4647_v46, %v3938_v54  ;;  %v1474_v54 = vadd.f32 %v6516_v40, %v1460_v29  ;;  %v3988_v46 = vld [vmem:[%s7010_s3 + $0x1b8] sm:$0xf0]  ;;  %v4605_v40 = vld [vmem:[%s7010_s3 + $0xc] sm:$0xf]  ;;  %v249_v29 = vperm.slane %v6058_v9, 3 }
 0x11d   :  { %v3991_v42 = vor.u32 %v4657_v44, %v3988_v46  ;;  %v3783_v0 = vor.u32 %v4605_v40, %v3780_v52  ;;  %v4691_v9 = vld [vmem:[%s7010_s3 + $0x2b4] sm:$0xf0]  ;;  %v4098_v44 = vld [vmem:[%s7010_s3 + $0x288] sm:$0xf] }
 0x11e   :  { %2468 = vmatpush.bf16.msrb.mxu0 %v4171_v49  ;;  %2551 = vmatpush.bf16.msrb.mxu1 %v3939_v56  ;;  %v3799_v49 = vor.u32 %v4609_v34, %v3796_v38  ;;  %v4204_v56 = vld [vmem:[%s7010_s3 + $0x370] sm:$0xf0]  ;;  %v4114_v34 = vld [vmem:[%s7010_s3 + $0x2a8] sm:$0xf]  ;;  %v4687_v46 = vld [vmem:[%s7010_s3 + $0x294] sm:$0xf0] }
 0x11f   :  { %2537 = vmatpush.bf16.msrb.mxu3 %v3811_v58  ;;  %v4621_v58 = vld [vmem:[%s7010_s3 + $0x8c] sm:$0xf]  ;;  %v4683_v40 = vld [vmem:[%s7010_s3 + $0x274] sm:$0xf0] }
 0x120   :  { %v3847_v6 = vor.u32 %v4621_v58, %v3844_v62  ;;  %v4207_v62 = vor.u32 %v4712_v53, %v4204_v56 }
 0x122   :  { %2469 = vmatpush.bf16.msrb.mxu0 %v4155_v63  ;;  %v1499_v21 = vpop.f32.mrf.mxu1  ;;  %2552 = vmatpush.bf16.msrb.mxu1 %v3923_v5  ;;  %v4188_v5 = vld [vmem:[%s7010_s3 + $0x350] sm:$0xf0] }
 0x123   :  { %2538 = vmatpush.bf16.msrb.mxu3 %v3795_v11  ;;  %v4639_v11 = vld [vmem:[%s7010_s3 + $0x114] sm:$0xf0] }
 0x124   :  { %v3907_v22 = vor.u32 %v4639_v11, %v3906_v10  ;;  %v4649_v11 = vld [vmem:[%s7010_s3 + $0x16c] sm:$0xf] }
 0x126   :  { %2518 = vmatpush.bf16.msra.mxu0 %v4271_v3  ;;  %2553 = vmatpush.bf16.msrb.mxu1 %v3907_v22  ;;  %v4708_v3 = vld [vmem:[%s7010_s3 + $0x344] sm:$0xf]  ;;  %v3940_v22 = vld [vmem:[%s7010_s3 + $0x158] sm:$0xf0] }
 0x127   :  { %2539 = vmatpush.bf16.msrb.mxu3 %v3779_v23  ;;  %v3831_v23 = vor.u32 %v4617_v12, %v3828_v15  ;;  %v3956_v12 = vld [vmem:[%s7010_s3 + $0x178] sm:$0xf0]  ;;  %v1555_v15 = vpop.f32.mrf.mxu0 }
 0x128   :  { %v3959_v17 = vor.u32 %v4649_v11, %v3956_v12 }
 0x129   :  { %2554 = vmatmul.bf16.vlgmr.msrb.gmra.mxu1 %v6421_v51 }
 0x12a   :  { %2540 = vmatmul.bf16.vlgmr.msrb.gmra.mxu3 %v6208_v45  ;;  %2519 = vmatpush.bf16.msra.mxu0 %v4255_v20  ;;  %v1501_v37 = vpop.f32.mrf.mxu1 }
 0x12b   :  { %2588 = vmatpush.bf16.msra.mxu3 %v3895_v26  ;;  %v4720_v26 = vld [vmem:[%s7010_s3 + $0x3a4] sm:$0xf]  ;;  %2602 = vmatpush.bf16.msra.mxu1 %v4023_v24 }
 0x12c   :  { %v4239_v32 = vor.u32 %v4720_v26, %v4236_v27  ;;  %v4695_v26 = vld [vmem:[%s7010_s3 + $0x2d4] sm:$0xf0] }
 0x12d   :  { %v1513_v7 = vpop.f32.mrf.mxu3 }
 0x12e   :  { %2520 = vmatpush.bf16.msra.mxu0 %v4239_v32  ;;  %v1541_v55 = vpop.f32.mrf.mxu2 }
 0x12f   :  { %2589 = vmatpush.bf16.msra.mxu3 %v3879_v35  ;;  %v1486_v35 = vadd.f32 %v1485_v13, %v1472_v28  ;;  %2603 = vmatpush.bf16.msra.mxu1 %v4007_v36  ;;  %v4191_v13 = vor.u32 %v4708_v3, %v4188_v5  ;;  %v4700_v28 = vld [vmem:[%s7010_s3 + $0x304] sm:$0xf]  ;;  %v3927_v36 = vor.u32 %v4641_v30, %v3924_v31  ;;  %v1557_v39 = vpop.f32.mrf.mxu0  ;;  %v4689_v30 = vld [vmem:[%s7010_s3 + $0x2ac] sm:$0xf]  ;;  %v4116_v31 = vld [vmem:[%s7010_s3 + $0x2b8] sm:$0xf0] }
 0x130   :  { %v1542_v38 = vadd.f32 %v1541_v55, %v249_v29  ;;  %v4148_v55 = vld [vmem:[%s7010_s3 + $0x2f8] sm:$0xf0] }
 0x131   :  { %v1500_v48 = vadd.f32 %v1499_v21, %v1486_v35  ;;  %v4645_v21 = vld [vmem:[%s7010_s3 + $0x14c] sm:$0xf]  ;;  %v3908_v35 = vld [vmem:[%s7010_s3 + $0x118] sm:$0xf0] }
 0x132   :  { %2521 = vmatpush.bf16.msra.mxu0 %v4223_v60  ;;  %v3943_v27 = vor.u32 %v4645_v21, %v3940_v22  ;;  %v3911_v60 = vor.u32 %v4637_v41, %v3908_v35  ;;  %v4693_v22 = vld [vmem:[%s7010_s3 + $0x2cc] sm:$0xf]  ;;  %v4723_v41 = vld [vmem:[%s7010_s3 + $0x3b4] sm:$0xf0] }
 0x133   :  { %2590 = vmatpush.bf16.msra.mxu3 %v3863_v57  ;;  %v1488_v57 = vadd.f32 %v1487_v47, %v1474_v54  ;;  %v1514_v58 = vadd.f32 %v1513_v7, %v1500_v48  ;;  %2604 = vmatpush.bf16.msra.mxu1 %v3991_v42  ;;  %v1556_v47 = vadd.f32 %v1555_v15, %v1542_v38  ;;  %v4671_v15 = vld [vmem:[%s7010_s3 + $0x214] sm:$0xf0]  ;;  %v4100_v38 = vld [vmem:[%s7010_s3 + $0x298] sm:$0xf0] }
 0x134   :  { %v4099_v48 = vor.u32 %v4687_v46, %v4098_v44  ;;  %v4084_v44 = vld [vmem:[%s7010_s3 + $0x278] sm:$0xf0]  ;;  %v4226_v46 = vld [vmem:[%s7010_s3 + $0x388] sm:$0xf] }
 0x135   :  { %v1502_v63 = vadd.f32 %v1501_v37, %v1488_v57  ;;  %v1515_v1 = vpop.f32.mrf.mxu3 }
 0x136   :  { %2522 = vmatpush.bf16.msra.mxu0 %v4207_v62  ;;  %v1543_v54 = vpop.f32.mrf.mxu2  ;;  %v4679_v62 = vld [vmem:[%s7010_s3 + $0x254] sm:$0xf0] }
 0x137   :  { %2591 = vmatpush.bf16.msra.mxu3 %v3847_v6  ;;  %v1528_v6 = vadd.f32 %v6563_v4, %v1514_v58  ;;  %v1516_v10 = vadd.f32 %v1515_v1, %v1502_v63  ;;  %v4699_v4 = vld [vmem:[%s7010_s3 + $0x2f4] sm:$0xf0]  ;;  %2605 = vmatpush.bf16.msra.mxu1 %v3975_v2  ;;  %v1544_v53 = vadd.f32 %v1543_v54, %v249_v29  ;;  %v4050_v2 = vld [vmem:[%s7010_s3 + $0x228] sm:$0xf] }
 0x138   :  { %v4147_v8 = vor.u32 %v4699_v4, %v4146_v16  ;;  %v4697_v4 = vld [vmem:[%s7010_s3 + $0x2ec] sm:$0xf] }
 0x139   :  { %v1530_v14 = vadd.f32 %v1529_v43, %v1516_v10  ;;  %v1632_v50 = vmax.f32 %v1528_v6, 0.0  ;;  %v4115_v43 = vor.u32 %v4691_v9, %v4114_v34  ;;  %v1558_v63 = vadd.f32 %v1557_v39, %v1544_v53  ;;  %v4727_v34 = vld [vmem:[%s7010_s3 + $0x3d4] sm:$0xf0]  ;;  %v4242_v39 = vld [vmem:[%s7010_s3 + $0x3a8] sm:$0xf] }
 0x13a   :  { %2523 = vmatpush.bf16.msra.mxu0 %v4191_v13  ;;  %v4119_v9 = vor.u32 %v4689_v30, %v4116_v31  ;;  %v4243_v54 = vor.u32 %v4723_v41, %v4242_v39  ;;  %v4739_v30 = vld [vmem:[%s7011_s5 + $0x38] sm:$0xff]  ;;  %v4738_v31 = vld [vmem:[%s7011_s5 + $0x30] sm:$0xff]  ;;  %v4745_v39 = vld [vmem:[%s7011_s5 + $0x68] sm:$0xff] }
 0x13b   :  { %2592 = vmatpush.bf16.msra.mxu3 %v3831_v23  ;;  %v1636_v20 = vmax.f32 %v1530_v14, 0.0  ;;  %v4175_v23 = vor.u32 %v4704_v18, %v4172_v19  ;;  %2606 = vmatpush.bf16.msra.mxu1 %v3959_v17  ;;  %v4034_v14 = vld [vmem:[%s7010_s3 + $0x208] sm:$0xf]  ;;  %v4732_v41 = vld [vmem:[%s7011_s5] sm:$0xff] }
 0x13c   :  { %v4035_v19 = vor.u32 %v4671_v15, %v4034_v14  ;;  %v4725_v14 = vld [vmem:[%s7010_s3 + $0x3cc] sm:$0xf]  ;;  %v4260_v15 = vld [vmem:[%s7010_s3 + $0x3d8] sm:$0xf0] }
 0x13d   :  { %v6678_v24 = vpack.c.bf16 %v1636_v20, %v1632_v50  ;;  %v4151_v20 = vor.u32 %v4697_v4, %v4148_v55  ;;  %v4721_v4 = vld [vmem:[%s7010_s3 + $0x3ac] sm:$0xf]  ;;  %v4244_v55 = vld [vmem:[%s7010_s3 + $0x3b8] sm:$0xf0] }
 0x13e   :  { %2524 = vmatpush.bf16.msra.mxu0 %v4175_v23  ;;  %v4132_v23 = vld [vmem:[%s7010_s3 + $0x2d8] sm:$0xf0] }
 0x13f   :  { %2593 = vmatpush.bf16.msra.mxu3 %v3815_v33  ;;  %2456 = vmatmul.bf16.vlgmr.msrb.gmra.mxu2 %v6678_v24  ;;  %v4131_v33 = vor.u32 %v4695_v26, %v4130_v25  ;;  %v4274_v25 = vld [vmem:[%s7010_s3 + $0x3e8] sm:$0xf]  ;;  %v4731_v26 = vld [vmem:[%s7010_s3 + $0x3f4] sm:$0xf0] }
 0x140   :  { %2560 = vmatpush.bf16.msrb.mxu2 %v4147_v8  ;;  %2607 = vmatpush.bf16.msra.mxu1 %v3943_v27  ;;  %v4275_v29 = vor.u32 %v4731_v26, %v4274_v25  ;;  %v4705_v25 = vld [vmem:[%s7010_s3 + $0x32c] sm:$0xf]  ;;  %v4180_v26 = vld [vmem:[%s7010_s3 + $0x338] sm:$0xf0] }
 0x142   :  { %v1569_v7 = vpop.f32.mrf.mxu1 }
 0x143   :  { %2594 = vmatpush.bf16.msra.mxu3 %v3799_v49  ;;  %v4082_v49 = vld [vmem:[%s7010_s3 + $0x268] sm:$0xf]  ;;  %v1570_v42 = vadd.f32 %v1569_v7, %v1556_v47 }
 0x144   :  { %2561 = vmatpush.bf16.msrb.mxu2 %v4131_v33  ;;  %2608 = vmatpush.bf16.msra.mxu1 %v3927_v36  ;;  %v4083_v57 = vor.u32 %v4683_v40, %v4082_v49  ;;  %v4258_v33 = vld [vmem:[%s7010_s3 + $0x3c8] sm:$0xf]  ;;  %v4685_v36 = vld [vmem:[%s7010_s3 + $0x28c] sm:$0xf]  ;;  %v4068_v40 = vld [vmem:[%s7010_s3 + $0x258] sm:$0xf0] }
 0x145   :  { %v1611_v58 = vpop.f32.mrf.mxu0  ;;  %v4259_v7 = vor.u32 %v4727_v34, %v4258_v33  ;;  %v4103_v35 = vor.u32 %v4685_v36, %v4100_v38  ;;  %v4677_v49 = vld [vmem:[%s7010_s3 + $0x24c] sm:$0xf]  ;;  %v4736_v34 = vld [vmem:[%s7011_s5 + $0x20] sm:$0xff]  ;;  %v4746_v36 = vld [vmem:[%s7011_s5 + $0x70] sm:$0xff] }
 0x146   :  { %v4737_v33 = vld [vmem:[%s7011_s5 + $0x28] sm:$0xff] }
 0x147   :  { %2595 = vmatpush.bf16.msra.mxu3 %v3783_v0  ;;  %v4067_v0 = vor.u32 %v4679_v62, %v4066_v61  ;;  %v4733_v38 = vld [vmem:[%s7011_s5 + $0x8] sm:$0xff] }
 0x148   :  { %2562 = vmatpush.bf16.msrb.mxu2 %v4115_v43  ;;  %2609 = vmatpush.bf16.msra.mxu1 %v3911_v60  ;;  %v4681_v43 = vld [vmem:[%s7010_s3 + $0x26c] sm:$0xf]  ;;  %v4719_v60 = vld [vmem:[%s7010_s3 + $0x394] sm:$0xf0] }
 0x149   :  { %v4087_v47 = vor.u32 %v4681_v43, %v4084_v44  ;;  %v4755_v43 = vld [vmem:[%s7011_s5 + $0xb8] sm:$0xff] }
 0x14a   :  { %2596 = vmatmul.bf16.vlgmr.msra.gmra.mxu3 %v6208_v45  ;;  %v4156_v45 = vld [vmem:[%s7010_s3 + $0x310] sm:$0xf0]  ;;  %v1571_v37 = vpop.f32.mrf.mxu1 }
 0x14b   :  { %v4159_v32 = vor.u32 %v4700_v28, %v4156_v45  ;;  %2610 = vmatmul.bf16.vlgmr.msra.gmra.mxu1 %v6421_v51  ;;  %v4675_v51 = vld [vmem:[%s7010_s3 + $0x234] sm:$0xf0]  ;;  %v1572_v3 = vadd.f32 %v1571_v37, %v1558_v63  ;;  %v4135_v45 = vor.u32 %v4693_v22, %v4132_v23  ;;  %v4210_v37 = vld [vmem:[%s7010_s3 + $0x368] sm:$0xf]  ;;  %v4669_v63 = vld [vmem:[%s7010_s3 + $0x20c] sm:$0xf]  ;;  %2916 = vmatpush.bf16.msrb.mxu3 %v4739_v30 }
 0x14c   :  { %2563 = vmatpush.bf16.msrb.mxu2 %v4099_v48  ;;  %v4051_v11 = vor.u32 %v4675_v51, %v4050_v2  ;;  %v4227_v48 = vor.u32 %v4719_v60, %v4226_v46  ;;  %v4707_v2 = vld [vmem:[%s7010_s3 + $0x334] sm:$0xf0]  ;;  %v4709_v22 = vld [vmem:[%s7010_s3 + $0x34c] sm:$0xf]  ;;  %v4196_v23 = vld [vmem:[%s7010_s3 + $0x358] sm:$0xf0] }
 0x14d   :  { %2525 = vmatpush.bf16.msra.mxu0 %v4159_v32  ;;  %v1583_v52 = vpop.f32.mrf.mxu3  ;;  %v1613_v17 = vpop.f32.mrf.mxu0 }
 0x14e   :  { %v1597_v56 = vpop.f32.mrf.mxu2  ;;  %v1584_v59 = vadd.f32 %v1583_v52, %v1570_v42  ;;  %v4715_v42 = vld [vmem:[%s7010_s3 + $0x374] sm:$0xf0]  ;;  %v4071_v52 = vor.u32 %v4677_v49, %v4068_v40  ;;  %v4741_v49 = vld [vmem:[%s7011_s5 + $0x48] sm:$0xff] }
 0x14f   :  { %2512 = vmatmul.bf16.vlgmr.msra.gmra.mxu2 %v6678_v24  ;;  %v4211_v53 = vor.u32 %v4715_v42, %v4210_v37  ;;  %2917 = vmatpush.bf16.msrb.mxu3 %v4738_v31  ;;  %v4753_v40 = vld [vmem:[%s7011_s5 + $0xa8] sm:$0xff]  ;;  %v6953_v37 = vld [vmem:[%s7013_s4] sm:$0xf] }
 0x150   :  { %2564 = vmatpush.bf16.msrb.mxu2 %v4083_v57  ;;  %v1598_v1 = vadd.f32 %v1597_v56, %v1584_v59  ;;  %v4673_v56 = vld [vmem:[%s7010_s3 + $0x22c] sm:$0xf]  ;;  %v4052_v57 = vld [vmem:[%s7010_s3 + $0x238] sm:$0xf0]  ;;  %v4711_v59 = vld [vmem:[%s7010_s3 + $0x354] sm:$0xf0] }
 0x151   :  { %v4055_v61 = vor.u32 %v4673_v56, %v4052_v57 }
 0x152   :  { %v1625_v5 = vpop.f32.mrf.mxu1  ;;  %v1612_v12 = vadd.f32 %v1611_v58, %v1598_v1  ;;  %v4194_v58 = vld [vmem:[%s7010_s3 + $0x348] sm:$0xf] }
 0x153   :  { %v4195_v62 = vor.u32 %v4711_v59, %v4194_v58  ;;  %v4178_v1 = vld [vmem:[%s7010_s3 + $0x328] sm:$0xf]  ;;  %2918 = vmatpush.bf16.msrb.mxu3 %v4737_v33  ;;  %v1772_v58 = vperm.slane %v6953_v37, 0  ;;  %v4751_v59 = vld [vmem:[%s7011_s5 + $0x98] sm:$0xff] }
 0x154   :  { %2565 = vmatpush.bf16.msrb.mxu2 %v4067_v0  ;;  %v1626_v50 = vadd.f32 %v1625_v5, %v1612_v12  ;;  %v4036_v0 = vld [vmem:[%s7010_s3 + $0x218] sm:$0xf0]  ;;  %v4162_v5 = vld [vmem:[%s7010_s3 + $0x308] sm:$0xf] }
 0x155   :  { %v1585_v6 = vpop.f32.mrf.mxu3  ;;  %v4039_v51 = vor.u32 %v4669_v63, %v4036_v0 }
 0x156   :  { %v1586_v10 = vadd.f32 %v1585_v6, %v1572_v3  ;;  %v1599_v13 = vpop.f32.mrf.mxu2  ;;  %v1633_v27 = vmax.f32 %v1626_v50, 0.0  ;;  %v4179_v3 = vor.u32 %v4707_v2, %v4178_v1  ;;  %v4703_v6 = vld [vmem:[%s7010_s3 + $0x314] sm:$0xf0]  ;;  %v4713_v50 = vld [vmem:[%s7010_s3 + $0x36c] sm:$0xf]  ;;  %v4750_v1 = vld [vmem:[%s7011_s5 + $0x90] sm:$0xff] }
 0x157   :  { %v4163_v12 = vor.u32 %v4703_v6, %v4162_v5  ;;  %2919 = vmatpush.bf16.msrb.mxu3 %v4736_v34 }
 0x158   :  { %v1600_v16 = vadd.f32 %v1599_v13, %v1586_v10  ;;  %2566 = vmatpush.bf16.msrb.mxu2 %v4051_v11  ;;  %v4729_v10 = vld [vmem:[%s7010_s3 + $0x3ec] sm:$0xf]  ;;  %v4276_v11 = vld [vmem:[%s7010_s3 + $0x3f8] sm:$0xf0] }
 0x159   :  { %v4279_v13 = vor.u32 %v4729_v10, %v4276_v11 }
 0x15a   :  { %v1614_v18 = vadd.f32 %v1613_v17, %v1600_v16  ;;  %v1627_v21 = vpop.f32.mrf.mxu1  ;;  %v4263_v16 = vor.u32 %v4725_v14, %v4260_v15  ;;  %v4717_v17 = vld [vmem:[%s7010_s3 + $0x38c] sm:$0xf] }
 0x15c   :  { %v1628_v8 = vadd.f32 %v1627_v21, %v1614_v18  ;;  %2567 = vmatpush.bf16.msrb.mxu2 %v4035_v19  ;;  %v4228_v18 = vld [vmem:[%s7010_s3 + $0x398] sm:$0xf0] }
 0x15d   :  { %v4231_v19 = vor.u32 %v4717_v17, %v4228_v18 }
 0x15e   :  { %v1637_v28 = vmax.f32 %v1628_v8, 0.0  ;;  %v4199_v8 = vor.u32 %v4709_v22, %v4196_v23  ;;  %v4761_v23 = vld [vmem:[%s7011_s5 + $0xe8] sm:$0xff] }
 0x15f   :  { %2568 = vmatmul.bf16.vlgmr.msrb.gmra.mxu2 %v6678_v24 }
 0x160   :  { %2616 = vmatpush.bf16.msra.mxu2 %v4151_v20  ;;  %v6768_v32 = vpack.c.bf16 %v1637_v28, %v1633_v27  ;;  %v4212_v20 = vld [vmem:[%s7010_s3 + $0x378] sm:$0xf0]  ;;  %v4183_v27 = vor.u32 %v4705_v25, %v4180_v26  ;;  %v4701_v28 = vld [vmem:[%s7010_s3 + $0x30c] sm:$0xf] }
 0x161   :  { %v4215_v21 = vor.u32 %v4713_v50, %v4212_v20  ;;  %v4762_v50 = vld [vmem:[%s7011_s5 + $0xf0] sm:$0xff] }
 0x162   :  { %2470 = vmatmul.bf16.vlgmr.msrb.gmra.mxu0 %v6768_v32 }
 0x163   :  { %2574 = vmatpush.bf16.msrb.mxu0 %v4275_v29 }
 0x164   :  { %2617 = vmatpush.bf16.msra.mxu2 %v4135_v45  ;;  %v4164_v45 = vld [vmem:[%s7010_s3 + $0x318] sm:$0xf0] }
 0x165   :  { %v4167_v29 = vor.u32 %v4701_v28, %v4164_v45  ;;  %v4760_v28 = vld [vmem:[%s7011_s5 + $0xe0] sm:$0xff] }
 0x167   :  { %2575 = vmatpush.bf16.msrb.mxu0 %v4259_v7  ;;  %v4734_v7 = vld [vmem:[%s7011_s5 + $0x10] sm:$0xff] }
 0x168   :  { %2618 = vmatpush.bf16.msra.mxu2 %v4119_v9  ;;  %v4747_v9 = vld [vmem:[%s7011_s5 + $0x78] sm:$0xff] }
 0x169   :  { %2930 = vmatpush.bf16.msrb.mxu1 %v4747_v9 }
 0x16b   :  { %2576 = vmatpush.bf16.msrb.mxu0 %v4243_v54  ;;  %v4743_v54 = vld [vmem:[%s7011_s5 + $0x58] sm:$0xff] }
 0x16c   :  { %2619 = vmatpush.bf16.msra.mxu2 %v4103_v35  ;;  %v4744_v35 = vld [vmem:[%s7011_s5 + $0x60] sm:$0xff] }
 0x16d   :  { %2931 = vmatpush.bf16.msrb.mxu1 %v4746_v36  ;;  %v2429_v46 = vpop.f32.mrf.mxu3  ;;  %v4759_v36 = vld [vmem:[%s7011_s5 + $0xd8] sm:$0xff] }
 0x16f   :  { %2577 = vmatpush.bf16.msrb.mxu0 %v4227_v48  ;;  %v4754_v48 = vld [vmem:[%s7011_s5 + $0xb0] sm:$0xff] }
 0x170   :  { %2620 = vmatpush.bf16.msra.mxu2 %v4087_v47  ;;  %v4742_v47 = vld [vmem:[%s7011_s5 + $0x50] sm:$0xff] }
 0x171   :  { %2932 = vmatpush.bf16.msrb.mxu1 %v4745_v39 }
 0x172   :  { %2526 = vmatmul.bf16.vlgmr.msra.gmra.mxu0 %v6768_v32 }
 0x173   :  { %2578 = vmatpush.bf16.msrb.mxu0 %v4211_v53  ;;  %v4752_v53 = vld [vmem:[%s7011_s5 + $0xa0] sm:$0xff] }
 0x174   :  { %2621 = vmatpush.bf16.msra.mxu2 %v4071_v52  ;;  %v4740_v52 = vld [vmem:[%s7011_s5 + $0x40] sm:$0xff] }
 0x175   :  { %2933 = vmatpush.bf16.msrb.mxu1 %v4744_v35  ;;  %v2431_v56 = vpop.f32.mrf.mxu3 }
 0x176   :  { %v2432_v63 = vadd.f32 %v2431_v56, %v1772_v58 }
 0x177   :  { %2579 = vmatpush.bf16.msrb.mxu0 %v4195_v62  ;;  %v2430_v62 = vadd.f32 %v2429_v46, %v1772_v58 }
 0x178   :  { %2622 = vmatpush.bf16.msra.mxu2 %v4055_v61 }
 0x179   :  { %2934 = vmatpush.bf16.msrb.mxu1 %v4743_v54 }
 0x17b   :  { %2580 = vmatpush.bf16.msrb.mxu0 %v4179_v3 }
 0x17c   :  { %2623 = vmatpush.bf16.msra.mxu2 %v4039_v51 }
 0x17d   :  { %2935 = vmatpush.bf16.msrb.mxu1 %v4742_v47  ;;  %v4757_v47 = vld [vmem:[%s7011_s5 + $0xc8] sm:$0xff] }
 0x17f   :  { %2624 = vmatmul.bf16.vlgmr.msra.gmra.mxu2 %v6678_v24  ;;  %2581 = vmatpush.bf16.msrb.mxu0 %v4163_v12  ;;  %v4247_v24 = vor.u32 %v4721_v4, %v4244_v55  ;;  %v4749_v12 = vld [vmem:[%s7011_s5 + $0x88] sm:$0xff]  ;;  %v4748_v4 = vld [vmem:[%s7011_s5 + $0x80] sm:$0xff]  ;;  %v4763_v55 = vld [vmem:[%s7011_s5 + $0xf8] sm:$0xff] }
 0x180   :  { %2944 = vmatpush.bf16.msrb.mxu2 %v4755_v43 }
 0x181   :  { %2936 = vmatpush.bf16.msrb.mxu1 %v4741_v49 }
 0x182   :  { %2582 = vmatmul.bf16.vlgmr.msrb.gmra.mxu0 %v6768_v32 }
 0x183   :  { %2630 = vmatpush.bf16.msra.mxu0 %v4279_v13 }
 0x184   :  { %2945 = vmatpush.bf16.msrb.mxu2 %v4754_v48 }
 0x185   :  { %v2443_v44 = vpop.f32.mrf.mxu1  ;;  %2937 = vmatpush.bf16.msrb.mxu1 %v4740_v52 }
 0x186   :  { %v2444_v0 = vadd.f32 %v2443_v44, %v2430_v62 }
 0x187   :  { %2631 = vmatpush.bf16.msra.mxu0 %v4263_v16 }
 0x188   :  { %2946 = vmatpush.bf16.msrb.mxu2 %v4753_v40 }
 0x18b   :  { %2632 = vmatpush.bf16.msra.mxu0 %v4247_v24  ;;  %v1773_v24 = vperm.slane %v6953_v37, 1 }
 0x18c   :  { %2947 = vmatpush.bf16.msrb.mxu2 %v4752_v53  ;;  %v4756_v53 = vld [vmem:[%s7011_s5 + $0xc0] sm:$0xff] }
 0x18d   :  { %v2445_v42 = vpop.f32.mrf.mxu1  ;;  %v2485_v2 = vpop.f32.mrf.mxu3 }
 0x18e   :  { %v2446_v3 = vadd.f32 %v2445_v42, %v2432_v63  ;;  %v2486_v22 = vadd.f32 %v2485_v2, %v1773_v24 }
 0x18f   :  { %2633 = vmatpush.bf16.msra.mxu0 %v4231_v19 }
 0x190   :  { %2948 = vmatpush.bf16.msrb.mxu2 %v4751_v59 }
 0x193   :  { %2634 = vmatpush.bf16.msra.mxu0 %v4215_v21 }
 0x194   :  { %2949 = vmatpush.bf16.msrb.mxu2 %v4750_v1  ;;  %v1775_v1 = vperm.slane %v6953_v37, 3 }
 0x195   :  { %v2499_v51 = vpop.f32.mrf.mxu1  ;;  %v2487_v18 = vpop.f32.mrf.mxu3 }
 0x196   :  { %v2500_v25 = vadd.f32 %v2499_v51, %v2486_v22 }
 0x197   :  { %2635 = vmatpush.bf16.msra.mxu0 %v4199_v8  ;;  %v2488_v8 = vadd.f32 %v2487_v18, %v1773_v24 }
 0x198   :  { %2950 = vmatpush.bf16.msrb.mxu2 %v4749_v12 }
 0x19b   :  { %2636 = vmatpush.bf16.msra.mxu0 %v4183_v27 }
 0x19c   :  { %2951 = vmatpush.bf16.msrb.mxu2 %v4748_v4 }
 0x19d   :  { %v2501_v19 = vpop.f32.mrf.mxu1 }
 0x19e   :  { %v2502_v26 = vadd.f32 %v2501_v19, %v2488_v8 }
 0x19f   :  { %2637 = vmatpush.bf16.msra.mxu0 %v4167_v29 }
 0x1a2   :  { %2638 = vmatmul.bf16.vlgmr.msra.gmra.mxu0 %v6768_v32  ;;  %v4735_v32 = vld [vmem:[%s7011_s5 + $0x18] sm:$0xff] }
 0x1a3   :  { %2920 = vmatpush.bf16.msrb.mxu3 %v4735_v32  ;;  %2958 = vmatpush.bf16.msrb.mxu0 %v4763_v55 }
 0x1a6   :  { %v2555_v31 = vpop.f32.mrf.mxu1 }
 0x1a7   :  { %2921 = vmatpush.bf16.msrb.mxu3 %v4734_v7  ;;  %2959 = vmatpush.bf16.msrb.mxu0 %v4762_v50  ;;  %v4769_v50 = vld [vmem:[%s7012_s6] ss:$0 sm:$0xff] }
 0x1ab   :  { %2922 = vmatpush.bf16.msrb.mxu3 %v4733_v38  ;;  %2960 = vmatpush.bf16.msrb.mxu0 %v4761_v23  ;;  %v1774_v38 = vperm.slane %v6953_v37, 2 }
 0x1ad   :  { %v2541_v45 = vpop.f32.mrf.mxu3 }
 0x1ae   :  { %v2542_v43 = vadd.f32 %v2541_v45, %v1774_v38  ;;  %v2557_v44 = vpop.f32.mrf.mxu1 }
 0x1af   :  { %2923 = vmatpush.bf16.msrb.mxu3 %v4732_v41  ;;  %2961 = vmatpush.bf16.msrb.mxu0 %v4760_v28  ;;  %v4758_v41 = vld [vmem:[%s7011_s5 + $0xd0] sm:$0xff] }
 0x1b3   :  { %2962 = vmatpush.bf16.msrb.mxu0 %v4759_v36 }
 0x1b5   :  { %v2543_v35 = vpop.f32.mrf.mxu3 }
 0x1b6   :  { %v2544_v46 = vadd.f32 %v2543_v35, %v1774_v38 }
 0x1b7   :  { %2963 = vmatpush.bf16.msrb.mxu0 %v4758_v41 }
 0x1b8   :  { %v2558_v49 = vadd.f32 %v2557_v44, %v2544_v46 }
 0x1bb   :  { %2964 = vmatpush.bf16.msrb.mxu0 %v4757_v47 }
 0x1bf   :  { %2965 = vmatpush.bf16.msrb.mxu0 %v4756_v53 }
 0x1c2   :  { %v2457_v60 = vpop.f32.mrf.mxu2 }
 0x1c3   :  { %v2458_v5 = vadd.f32 %v2457_v60, %v2444_v0  ;;  %v2556_v60 = vadd.f32 %v2555_v31, %v2542_v43 }
 0x1c8   :  { %v2611_v63 = vpop.f32.mrf.mxu1 }
 0x1ca   :  { %v2459_v57 = vpop.f32.mrf.mxu2 }
 0x1cb   :  { %v2460_v10 = vadd.f32 %v2459_v57, %v2446_v3 }
 0x1cd   :  { %v2597_v62 = vpop.f32.mrf.mxu3 }
 0x1ce   :  { %v2598_v3 = vadd.f32 %v2597_v62, %v1775_v1 }
 0x1d2   :  { %v2513_v6 = vpop.f32.mrf.mxu2 }
 0x1d3   :  { %v2514_v27 = vadd.f32 %v2513_v6, %v2500_v25 }
 0x1d5   :  { %v2599_v2 = vpop.f32.mrf.mxu3 }
 0x1d6   :  { %v2600_v6 = vadd.f32 %v2599_v2, %v1775_v1 }
 0x1da   :  { %v2515_v20 = vpop.f32.mrf.mxu2 }
 0x1db   :  { %v2516_v29 = vadd.f32 %v2515_v20, %v2502_v26 }
 0x1df   :  { %v2471_v61 = vpop.f32.mrf.mxu0 }
 0x1e0   :  { %v2472_v11 = vadd.f32 %v2471_v61, %v2458_v5  ;;  %v2613_v5 = vpop.f32.mrf.mxu1 }
 0x1e1   :  { %v2614_v12 = vadd.f32 %v2613_v5, %v2600_v6 }
 0x1e2   :  { %v2644_v15 = vmax.f32 %v2472_v11, 0.0  ;;  %v2569_v32 = vpop.f32.mrf.mxu2 }
 0x1e3   :  { %v2570_v40 = vadd.f32 %v2569_v32, %v2556_v60 }
 0x1e7   :  { %v2473_v13 = vpop.f32.mrf.mxu0 }
 0x1e8   :  { %v2474_v14 = vadd.f32 %v2473_v13, %v2460_v10  ;;  %v2612_v10 = vadd.f32 %v2611_v63, %v2598_v3 }
 0x1ea   :  { %v2648_v16 = vmax.f32 %v2474_v14, 0.0  ;;  %v2571_v48 = vpop.f32.mrf.mxu2 }
 0x1eb   :  { %v2572_v42 = vadd.f32 %v2571_v48, %v2558_v49 }
 0x1ec   :  { %v2652_v17 = vpack.c.bf16 %v2648_v16, %v2644_v15 }
 0x1ee   :  { %2924 = vmatmul.bf16.vlgmr.msrb.gmra.mxu3 %v2652_v17 }
 0x1ef   :  { %v2527_v21 = vpop.f32.mrf.mxu0 }
 0x1f0   :  { %v2528_v30 = vadd.f32 %v2527_v21, %v2514_v27 }
 0x1f2   :  { %v2645_v9 = vmax.f32 %v2528_v30, 0.0 }
 0x1f7   :  { %v2529_v33 = vpop.f32.mrf.mxu0 }
 0x1f8   :  { %v2530_v34 = vadd.f32 %v2529_v33, %v2516_v29 }
 0x1fa   :  { %v2649_v7 = vmax.f32 %v2530_v34, 0.0 }
 0x1fc   :  { %v2653_v39 = vpack.c.bf16 %v2649_v7, %v2645_v9 }
 0x1fe   :  { %2938 = vmatmul.bf16.vlgmr.msrb.gmra.mxu1 %v2653_v39 }
 0x1ff   :  { %v2583_v54 = vpop.f32.mrf.mxu0 }
 0x200   :  { %v2584_v52 = vadd.f32 %v2583_v54, %v2570_v40 }
 0x202   :  { %v2646_v58 = vmax.f32 %v2584_v52, 0.0  ;;  %v2625_v0 = vpop.f32.mrf.mxu2 }
 0x203   :  { %v2626_v13 = vadd.f32 %v2625_v0, %v2612_v10 }
 0x207   :  { %v2585_v56 = vpop.f32.mrf.mxu0 }
 0x208   :  { %v2586_v57 = vadd.f32 %v2585_v56, %v2572_v42 }
 0x20a   :  { %v2650_v59 = vmax.f32 %v2586_v57, 0.0  ;;  %v2627_v11 = vpop.f32.mrf.mxu2 }
 0x20b   :  { %v2628_v14 = vadd.f32 %v2627_v11, %v2614_v12 }
 0x20c   :  { %v2654_v61 = vpack.c.bf16 %v2650_v59, %v2646_v58 }
 0x20e   :  { %2952 = vmatmul.bf16.vlgmr.msrb.gmra.mxu2 %v2654_v61 }
 0x21f   :  { %v2639_v51 = vpop.f32.mrf.mxu0 }
 0x220   :  { %v2640_v15 = vadd.f32 %v2639_v51, %v2626_v13 }
 0x222   :  { %v2647_v55 = vmax.f32 %v2640_v15, 0.0 }
 0x227   :  { %v2641_v16 = vpop.f32.mrf.mxu0 }
 0x228   :  { %v2642_v4 = vadd.f32 %v2641_v16, %v2628_v14 }
 0x22a   :  { %v2651_v24 = vmax.f32 %v2642_v4, 0.0 }
 0x22c   :  { %v2655_v17 = vpack.c.bf16 %v2651_v24, %v2647_v55 }
 0x22e   :  { %2966 = vmatmul.bf16.vlgmr.msrb.gmra.mxu0 %v2655_v17 }
 0x271   :  { %v2925_v18 = vpop.f32.mrf.mxu3 }
 0x272   :  { %v2926_v23 = vadd.f32 %v4769_v50, %v2925_v18 }
 0x279   :  { %v2927_v20 = vpop.f32.mrf.mxu3 }
 0x27a   :  { %v2928_v8 = vadd.f32 %v4769_v50, %v2927_v20 }
 0x27b   :  { %v2939_v19 = vpop.f32.mrf.mxu1 }
 0x27c   :  { %v2940_v26 = vadd.f32 %v2939_v19, %v2926_v23 }
 0x283   :  { %v2941_v22 = vpop.f32.mrf.mxu1 }
 0x284   :  { %v2942_v27 = vadd.f32 %v2941_v22, %v2928_v8 }
 0x291   :  { %v2953_v37 = vpop.f32.mrf.mxu2 }
 0x292   :  { %v2954_v28 = vadd.f32 %v2953_v37, %v2940_v26 }
 0x299   :  { %v2955_v25 = vpop.f32.mrf.mxu2 }
 0x29a   :  { %v2956_v45 = vadd.f32 %v2955_v25, %v2942_v27 }
 0x2ab   :  { %v2967_v21 = vpop.f32.mrf.mxu0 }
 0x2ac   :  { %v2968_v30 = vadd.f32 %v2967_v21, %v2954_v28 }
 0x2b3   :  { %v2969_v29 = vpop.f32.mrf.mxu0 }
 0x2b4   :  { %v2970_v31 = vadd.f32 %v2969_v29, %v2956_v45 }
 0x2b6   :  { %v4767_v33 = vpack.c.bf16 %v2970_v31, %v2968_v30 }
 0x2b8   :  { %4768 = vst [vmem:[%s7014_s7] sm:$0xff] %v4767_v33  }

</bundles_post_ra>
